<compile_context>
chip_gen: v6e
topology: v6e:2x2x1
jax: 0.10.0
libtpu: 0.0.40
codegen_flags: <defaults>
</compile_context>

<pallas_src>
import jax
import jax.numpy as jnp
from jax.experimental import pallas as pl
from jax.experimental.pallas import tpu as pltpu

# Full f32 matmul precision for the wrapper projection and the pure-JAX reference
# (the in-kernel recurrence is exact f32 scalar FMAs anyway).
jax.config.update("jax_default_matmul_precision", "highest")

BATCH_LANES = 128  # batch block width on the 128-lane axis


def _rnn_fc_kernel(xproj_ref,   # (T, H, BB) layer-0 pre-activations, batch on lanes
                   params_ref,  # (3*H*H + 2*H + 1,) flat SMEM scalars
                   out_ref):    # (1, BB)    lane-dense output
    T, H, BB = xproj_ref.shape

    # Packed scalar-parameter layout (row-major 3x3 blocks):
    #   [0:H*H]                 W_hh0
    #   [H*H:2*H*H]             W_ih1
    #   [2*H*H:3*H*H]           W_hh1
    #   [3*H*H:3*H*H+H]         b1 = b_ih1 + b_hh1
    #   [3*H*H+H:3*H*H+2*H]     fc weight
    #   [3*H*H+2*H]             fc bias
    off_hh0 = 0
    off_ih1 = H * H
    off_hh1 = 2 * H * H
    off_b1 = 3 * H * H
    off_fcw = 3 * H * H + H
    off_fcb = 3 * H * H + 2 * H
    n_par = off_fcb + 1

    # Hoist every scalar read out of the unrolled loop (JAX won't CSE them).
    p = [params_ref[i] for i in range(n_par)]

    h0 = [None] * H  # layer-0 state rows, each (1, BB)
    h1 = [None] * H  # layer-1 state rows, each (1, BB)

    # T is static & small: fully unrolled.  Per step the serial chain is pure
    # VPU FMAs + EUP tanh; no MXU latency, no cross-lane work.
    for t in range(T):
        xp = xproj_ref[t]                       # (H, BB) — one tile load per step

        h0_new = []
        for j in range(H):
            acc = xp[j:j + 1, :]                # input proj + layer-0 biases
            if t > 0:
                for k in range(H):
                    acc = acc + p[off_hh0 + j * H + k] * h0[k]
            h0_new.append(jnp.tanh(acc))

        h1_new = []
        for j in range(H):
            acc = p[off_ih1 + j * H + 0] * h0_new[0]
            for k in range(1, H):
                acc = acc + p[off_ih1 + j * H + k] * h0_new[k]
            if t > 0:
                for k in range(H):
                    acc = acc + p[off_hh1 + j * H + k] * h1[k]
            h1_new.append(jnp.tanh(acc + p[off_b1 + j]))

        h0, h1 = h0_new, h1_new

    # FC head on the top layer's last hidden state: 3 scalar FMAs + bias,
    # written lane-dense as (1, BB).
    acc = p[off_fcw + 0] * h1[0]
    for j in range(1, H):
        acc = acc + p[off_fcw + j] * h1[j]
    out_ref[...] = acc + p[off_fcb]


@jax.jit
def simple_rnn_forward(x, params):
    """x: (B, input_size, seq) float32 -> (B,) float32, matching SimpleRNN.forward."""
    (w_ih0, w_hh0, b_ih0, b_hh0,
     w_ih1, w_hh1, b_ih1, b_hh1,
     fc_w, fc_b) = params

    B, D, T = x.shape
    H = w_hh0.shape[0]
    BB = BATCH_LANES

    # Pad the batch to a full multiple of the lane block (padded rows discarded).
    Bp = ((B + BB - 1) // BB) * BB
    x = x.astype(jnp.float32)
    if Bp != B:
        x = jnp.pad(x, ((0, Bp - B), (0, 0), (0, 0)))

    # Layer-0 input projection for ALL timesteps in one XLA dot, batch-on-lanes,
    # with both layer-0 biases folded in:  xproj[t, h, b].
    xproj = (jnp.einsum('bdt,hd->thb', x, w_ih0.astype(jnp.float32),
                        precision=jax.lax.Precision.HIGHEST)
             + (b_ih0 + b_hh0).astype(jnp.float32)[None, :, None])    # (T, H, Bp)

    # Pack every remaining tiny parameter into a single flat SMEM vector.
    pflat = jnp.concatenate([
        w_hh0.reshape(-1), w_ih1.reshape(-1), w_hh1.reshape(-1),
        (b_ih1 + b_hh1).reshape(-1), fc_w.reshape(-1), fc_b.reshape(-1),
    ]).astype(jnp.float32)                                            # (3H^2 + 2H + 1,)

    out = pl.pallas_call(
        _rnn_fc_kernel,
        out_shape=jax.ShapeDtypeStruct((1, Bp), jnp.float32),
        grid=(Bp // BB,),   # (1,) for B <= 128; parallel blocks only for huge batches
        in_specs=[
            pl.BlockSpec((T, H, BB), lambda i: (0, 0, i)),            # xproj block
            pl.BlockSpec(memory_space=pltpu.MemorySpace.SMEM),        # packed scalars
        ],
        out_specs=pl.BlockSpec((1, BB), lambda i: (0, i)),            # lane-dense output
        compiler_params=pltpu.CompilerParams(
            dimension_semantics=("parallel",)),
    )(xproj, pflat)

    return out[0, :B]  # (B,)


def _reference_forward(x, params):
    """Pure-JAX reference replicating PyTorch nn.RNN(tanh, 2 layers) + Linear."""
    (w_ih0, w_hh0, b_ih0, b_hh0,
     w_ih1, w_hh1, b_ih1, b_hh1,
     fc_w, fc_b) = params
    B, D, T = x.shape
    H = w_hh0.shape[0]
    xs = jnp.transpose(x, (0, 2, 1))  # (B, T, D)
    h0 = jnp.zeros((B, H), jnp.float32)
    h1 = jnp.zeros((B, H), jnp.float32)
    for t in range(T):
        xt = xs[:, t, :]
        h0 = jnp.tanh(xt @ w_ih0.T + b_ih0 + h0 @ w_hh0.T + b_hh0)
        h1 = jnp.tanh(h0 @ w_ih1.T + b_ih1 + h1 @ w_hh1.T + b_hh1)
    return (h1 @ fc_w.T + fc_b).reshape(-1)


def _init_params(key, input_size=40, hidden_size=3):
    """Deterministic init mirroring PyTorch's uniform(-1/sqrt(H), 1/sqrt(H))."""
    H, D = hidden_size, input_size
    bound = 1.0 / jnp.sqrt(jnp.float32(H))
    ks = jax.random.split(key, 10)
    u = lambda k, shape: jax.random.uniform(k, shape, jnp.float32, -bound, bound)
    w_ih0 = u(ks[0], (H, D)); w_hh0 = u(ks[1], (H, H))
    b_ih0 = u(ks[2], (H,));   b_hh0 = u(ks[3], (H,))
    w_ih1 = u(ks[4], (H, H)); w_hh1 = u(ks[5], (H, H))
    b_ih1 = u(ks[6], (H,));   b_hh1 = u(ks[7], (H,))
    fc_w = u(ks[8], (1, H));  fc_b = u(ks[9], (1,))
    return (w_ih0, w_hh0, b_ih0, b_hh0,
            w_ih1, w_hh1, b_ih1, b_hh1,
            fc_w, fc_b)


if __name__ == "__main__":
    key = jax.random.PRNGKey(0)
    k_x, k_p = jax.random.split(key)

    # Shapes implied by the module: input_size=40, hidden_size=3, 2 layers.
    # 16 sequences of length 8; with batch-on-lanes they all live in one
    # lane-dense block (grid=(1,)).
    B, D, T = 16, 40, 8
    x = jax.random.normal(k_x, (B, D, T), jnp.float32)
    params = _init_params(k_p, input_size=D, hidden_size=3)

    y = simple_rnn_forward(x, params)
    jax.block_until_ready(y)

    y_ref = _reference_forward(x, params)
    assert y.shape == (B,)
    assert jnp.allclose(y, y_ref, atol=1e-4, rtol=1e-4), (y, y_ref)

    print("KERNEL_OK")
</pallas_src>

<mosaic_0001>
module attributes {stable_mosaic.version = 11 : i64} {
  func.func @_rnn_fc_kernel(%arg0: i32, %arg1: memref<8x3x128xf32, #tpu.memory_space<vmem>>, %arg2: memref<34xf32, #tpu.memory_space<smem>>, %arg3: memref<1x128xf32, #tpu.memory_space<vmem>>) attributes {dimension_semantics = [#tpu.dimension_semantics<parallel>], iteration_bounds = array<i64: 1>, scalar_prefetch = 0 : i64, scratch_operands = 0 : i64, tpu.core_type = #tpu.core_type<tc>, window_params = [{transform_indices = @transform_0, window_bounds = array<i64: 8, 3, 128>}, {transform_indices = @transform_1, window_bounds = array<i64: 34>}, {transform_indices = @transform_2, window_bounds = array<i64: 1, 128>}]} {
    %c0 = arith.constant 0 : index
    %0 = memref.load %arg2[%c0] : memref<34xf32, #tpu.memory_space<smem>>
    %c1 = arith.constant 1 : index
    %1 = memref.load %arg2[%c1] : memref<34xf32, #tpu.memory_space<smem>>
    %c2 = arith.constant 2 : index
    %2 = memref.load %arg2[%c2] : memref<34xf32, #tpu.memory_space<smem>>
    %c3 = arith.constant 3 : index
    %3 = memref.load %arg2[%c3] : memref<34xf32, #tpu.memory_space<smem>>
    %c4 = arith.constant 4 : index
    %4 = memref.load %arg2[%c4] : memref<34xf32, #tpu.memory_space<smem>>
    %c5 = arith.constant 5 : index
    %5 = memref.load %arg2[%c5] : memref<34xf32, #tpu.memory_space<smem>>
    %c6 = arith.constant 6 : index
    %6 = memref.load %arg2[%c6] : memref<34xf32, #tpu.memory_space<smem>>
    %c7 = arith.constant 7 : index
    %7 = memref.load %arg2[%c7] : memref<34xf32, #tpu.memory_space<smem>>
    %c8 = arith.constant 8 : index
    %8 = memref.load %arg2[%c8] : memref<34xf32, #tpu.memory_space<smem>>
    %c9 = arith.constant 9 : index
    %9 = memref.load %arg2[%c9] : memref<34xf32, #tpu.memory_space<smem>>
    %c10 = arith.constant 10 : index
    %10 = memref.load %arg2[%c10] : memref<34xf32, #tpu.memory_space<smem>>
    %c11 = arith.constant 11 : index
    %11 = memref.load %arg2[%c11] : memref<34xf32, #tpu.memory_space<smem>>
    %c12 = arith.constant 12 : index
    %12 = memref.load %arg2[%c12] : memref<34xf32, #tpu.memory_space<smem>>
    %c13 = arith.constant 13 : index
    %13 = memref.load %arg2[%c13] : memref<34xf32, #tpu.memory_space<smem>>
    %c14 = arith.constant 14 : index
    %14 = memref.load %arg2[%c14] : memref<34xf32, #tpu.memory_space<smem>>
    %c15 = arith.constant 15 : index
    %15 = memref.load %arg2[%c15] : memref<34xf32, #tpu.memory_space<smem>>
    %c16 = arith.constant 16 : index
    %16 = memref.load %arg2[%c16] : memref<34xf32, #tpu.memory_space<smem>>
    %c17 = arith.constant 17 : index
    %17 = memref.load %arg2[%c17] : memref<34xf32, #tpu.memory_space<smem>>
    %c18 = arith.constant 18 : index
    %18 = memref.load %arg2[%c18] : memref<34xf32, #tpu.memory_space<smem>>
    %c19 = arith.constant 19 : index
    %19 = memref.load %arg2[%c19] : memref<34xf32, #tpu.memory_space<smem>>
    %c20 = arith.constant 20 : index
    %20 = memref.load %arg2[%c20] : memref<34xf32, #tpu.memory_space<smem>>
    %c21 = arith.constant 21 : index
    %21 = memref.load %arg2[%c21] : memref<34xf32, #tpu.memory_space<smem>>
    %c22 = arith.constant 22 : index
    %22 = memref.load %arg2[%c22] : memref<34xf32, #tpu.memory_space<smem>>
    %c23 = arith.constant 23 : index
    %23 = memref.load %arg2[%c23] : memref<34xf32, #tpu.memory_space<smem>>
    %c24 = arith.constant 24 : index
    %24 = memref.load %arg2[%c24] : memref<34xf32, #tpu.memory_space<smem>>
    %c25 = arith.constant 25 : index
    %25 = memref.load %arg2[%c25] : memref<34xf32, #tpu.memory_space<smem>>
    %c26 = arith.constant 26 : index
    %26 = memref.load %arg2[%c26] : memref<34xf32, #tpu.memory_space<smem>>
    %c27 = arith.constant 27 : index
    %27 = memref.load %arg2[%c27] : memref<34xf32, #tpu.memory_space<smem>>
    %c28 = arith.constant 28 : index
    %28 = memref.load %arg2[%c28] : memref<34xf32, #tpu.memory_space<smem>>
    %c29 = arith.constant 29 : index
    %29 = memref.load %arg2[%c29] : memref<34xf32, #tpu.memory_space<smem>>
    %c30 = arith.constant 30 : index
    %30 = memref.load %arg2[%c30] : memref<34xf32, #tpu.memory_space<smem>>
    %c31 = arith.constant 31 : index
    %31 = memref.load %arg2[%c31] : memref<34xf32, #tpu.memory_space<smem>>
    %c32 = arith.constant 32 : index
    %32 = memref.load %arg2[%c32] : memref<34xf32, #tpu.memory_space<smem>>
    %c33 = arith.constant 33 : index
    %33 = memref.load %arg2[%c33] : memref<34xf32, #tpu.memory_space<smem>>
    %c0_0 = arith.constant 0 : index
    %c0_1 = arith.constant 0 : index
    %c0_2 = arith.constant 0 : index
    %34 = vector.load %arg1[%c0_0, %c0_1, %c0_2] : memref<8x3x128xf32, #tpu.memory_space<vmem>>, vector<1x3x128xf32>
    %35 = vector.shape_cast %34 : vector<1x3x128xf32> to vector<3x128xf32>
    %36 = vector.extract_strided_slice %35 {offsets = [0, 0], sizes = [1, 128], strides = [1, 1]} : vector<3x128xf32> to vector<1x128xf32>
    %37 = math.tanh %36 : vector<1x128xf32>
    %38 = vector.extract_strided_slice %35 {offsets = [1, 0], sizes = [1, 128], strides = [1, 1]} : vector<3x128xf32> to vector<1x128xf32>
    %39 = math.tanh %38 : vector<1x128xf32>
    %40 = vector.extract_strided_slice %35 {offsets = [2, 0], sizes = [1, 128], strides = [1, 1]} : vector<3x128xf32> to vector<1x128xf32>
    %41 = math.tanh %40 : vector<1x128xf32>
    %42 = vector.broadcast %9 : f32 to vector<1x128xf32>
    %43 = arith.mulf %42, %37 : vector<1x128xf32>
    %44 = vector.broadcast %10 : f32 to vector<1x128xf32>
    %45 = arith.mulf %44, %39 : vector<1x128xf32>
    %46 = arith.addf %43, %45 : vector<1x128xf32>
    %47 = vector.broadcast %11 : f32 to vector<1x128xf32>
    %48 = arith.mulf %47, %41 : vector<1x128xf32>
    %49 = arith.addf %46, %48 : vector<1x128xf32>
    %50 = vector.broadcast %27 : f32 to vector<1x128xf32>
    %51 = arith.addf %49, %50 : vector<1x128xf32>
    %52 = math.tanh %51 : vector<1x128xf32>
    %53 = vector.broadcast %12 : f32 to vector<1x128xf32>
    %54 = arith.mulf %53, %37 : vector<1x128xf32>
    %55 = vector.broadcast %13 : f32 to vector<1x128xf32>
    %56 = arith.mulf %55, %39 : vector<1x128xf32>
    %57 = arith.addf %54, %56 : vector<1x128xf32>
    %58 = vector.broadcast %14 : f32 to vector<1x128xf32>
    %59 = arith.mulf %58, %41 : vector<1x128xf32>
    %60 = arith.addf %57, %59 : vector<1x128xf32>
    %61 = vector.broadcast %28 : f32 to vector<1x128xf32>
    %62 = arith.addf %60, %61 : vector<1x128xf32>
    %63 = math.tanh %62 : vector<1x128xf32>
    %64 = vector.broadcast %15 : f32 to vector<1x128xf32>
    %65 = arith.mulf %64, %37 : vector<1x128xf32>
    %66 = vector.broadcast %16 : f32 to vector<1x128xf32>
    %67 = arith.mulf %66, %39 : vector<1x128xf32>
    %68 = arith.addf %65, %67 : vector<1x128xf32>
    %69 = vector.broadcast %17 : f32 to vector<1x128xf32>
    %70 = arith.mulf %69, %41 : vector<1x128xf32>
    %71 = arith.addf %68, %70 : vector<1x128xf32>
    %72 = vector.broadcast %29 : f32 to vector<1x128xf32>
    %73 = arith.addf %71, %72 : vector<1x128xf32>
    %74 = math.tanh %73 : vector<1x128xf32>
    %c1_3 = arith.constant 1 : index
    %c0_4 = arith.constant 0 : index
    %c0_5 = arith.constant 0 : index
    %75 = vector.load %arg1[%c1_3, %c0_4, %c0_5] : memref<8x3x128xf32, #tpu.memory_space<vmem>>, vector<1x3x128xf32>
    %76 = vector.shape_cast %75 : vector<1x3x128xf32> to vector<3x128xf32>
    %77 = vector.extract_strided_slice %76 {offsets = [0, 0], sizes = [1, 128], strides = [1, 1]} : vector<3x128xf32> to vector<1x128xf32>
    %78 = vector.broadcast %0 : f32 to vector<1x128xf32>
    %79 = arith.mulf %78, %37 : vector<1x128xf32>
    %80 = arith.addf %77, %79 : vector<1x128xf32>
    %81 = vector.broadcast %1 : f32 to vector<1x128xf32>
    %82 = arith.mulf %81, %39 : vector<1x128xf32>
    %83 = arith.addf %80, %82 : vector<1x128xf32>
    %84 = vector.broadcast %2 : f32 to vector<1x128xf32>
    %85 = arith.mulf %84, %41 : vector<1x128xf32>
    %86 = arith.addf %83, %85 : vector<1x128xf32>
    %87 = math.tanh %86 : vector<1x128xf32>
    %88 = vector.extract_strided_slice %76 {offsets = [1, 0], sizes = [1, 128], strides = [1, 1]} : vector<3x128xf32> to vector<1x128xf32>
    %89 = vector.broadcast %3 : f32 to vector<1x128xf32>
    %90 = arith.mulf %89, %37 : vector<1x128xf32>
    %91 = arith.addf %88, %90 : vector<1x128xf32>
    %92 = vector.broadcast %4 : f32 to vector<1x128xf32>
    %93 = arith.mulf %92, %39 : vector<1x128xf32>
    %94 = arith.addf %91, %93 : vector<1x128xf32>
    %95 = vector.broadcast %5 : f32 to vector<1x128xf32>
    %96 = arith.mulf %95, %41 : vector<1x128xf32>
    %97 = arith.addf %94, %96 : vector<1x128xf32>
    %98 = math.tanh %97 : vector<1x128xf32>
    %99 = vector.extract_strided_slice %76 {offsets = [2, 0], sizes = [1, 128], strides = [1, 1]} : vector<3x128xf32> to vector<1x128xf32>
    %100 = vector.broadcast %6 : f32 to vector<1x128xf32>
    %101 = arith.mulf %100, %37 : vector<1x128xf32>
    %102 = arith.addf %99, %101 : vector<1x128xf32>
    %103 = vector.broadcast %7 : f32 to vector<1x128xf32>
    %104 = arith.mulf %103, %39 : vector<1x128xf32>
    %105 = arith.addf %102, %104 : vector<1x128xf32>
    %106 = vector.broadcast %8 : f32 to vector<1x128xf32>
    %107 = arith.mulf %106, %41 : vector<1x128xf32>
    %108 = arith.addf %105, %107 : vector<1x128xf32>
    %109 = math.tanh %108 : vector<1x128xf32>
    %110 = vector.broadcast %9 : f32 to vector<1x128xf32>
    %111 = arith.mulf %110, %87 : vector<1x128xf32>
    %112 = vector.broadcast %10 : f32 to vector<1x128xf32>
    %113 = arith.mulf %112, %98 : vector<1x128xf32>
    %114 = arith.addf %111, %113 : vector<1x128xf32>
    %115 = vector.broadcast %11 : f32 to vector<1x128xf32>
    %116 = arith.mulf %115, %109 : vector<1x128xf32>
    %117 = arith.addf %114, %116 : vector<1x128xf32>
    %118 = vector.broadcast %18 : f32 to vector<1x128xf32>
    %119 = arith.mulf %118, %52 : vector<1x128xf32>
    %120 = arith.addf %117, %119 : vector<1x128xf32>
    %121 = vector.broadcast %19 : f32 to vector<1x128xf32>
    %122 = arith.mulf %121, %63 : vector<1x128xf32>
    %123 = arith.addf %120, %122 : vector<1x128xf32>
    %124 = vector.broadcast %20 : f32 to vector<1x128xf32>
    %125 = arith.mulf %124, %74 : vector<1x128xf32>
    %126 = arith.addf %123, %125 : vector<1x128xf32>
    %127 = vector.broadcast %27 : f32 to vector<1x128xf32>
    %128 = arith.addf %126, %127 : vector<1x128xf32>
    %129 = math.tanh %128 : vector<1x128xf32>
    %130 = vector.broadcast %12 : f32 to vector<1x128xf32>
    %131 = arith.mulf %130, %87 : vector<1x128xf32>
    %132 = vector.broadcast %13 : f32 to vector<1x128xf32>
    %133 = arith.mulf %132, %98 : vector<1x128xf32>
    %134 = arith.addf %131, %133 : vector<1x128xf32>
    %135 = vector.broadcast %14 : f32 to vector<1x128xf32>
    %136 = arith.mulf %135, %109 : vector<1x128xf32>
    %137 = arith.addf %134, %136 : vector<1x128xf32>
    %138 = vector.broadcast %21 : f32 to vector<1x128xf32>
    %139 = arith.mulf %138, %52 : vector<1x128xf32>
    %140 = arith.addf %137, %139 : vector<1x128xf32>
    %141 = vector.broadcast %22 : f32 to vector<1x128xf32>
    %142 = arith.mulf %141, %63 : vector<1x128xf32>
    %143 = arith.addf %140, %142 : vector<1x128xf32>
    %144 = vector.broadcast %23 : f32 to vector<1x128xf32>
    %145 = arith.mulf %144, %74 : vector<1x128xf32>
    %146 = arith.addf %143, %145 : vector<1x128xf32>
    %147 = vector.broadcast %28 : f32 to vector<1x128xf32>
    %148 = arith.addf %146, %147 : vector<1x128xf32>
    %149 = math.tanh %148 : vector<1x128xf32>
    %150 = vector.broadcast %15 : f32 to vector<1x128xf32>
    %151 = arith.mulf %150, %87 : vector<1x128xf32>
    %152 = vector.broadcast %16 : f32 to vector<1x128xf32>
    %153 = arith.mulf %152, %98 : vector<1x128xf32>
    %154 = arith.addf %151, %153 : vector<1x128xf32>
    %155 = vector.broadcast %17 : f32 to vector<1x128xf32>
    %156 = arith.mulf %155, %109 : vector<1x128xf32>
    %157 = arith.addf %154, %156 : vector<1x128xf32>
    %158 = vector.broadcast %24 : f32 to vector<1x128xf32>
    %159 = arith.mulf %158, %52 : vector<1x128xf32>
    %160 = arith.addf %157, %159 : vector<1x128xf32>
    %161 = vector.broadcast %25 : f32 to vector<1x128xf32>
    %162 = arith.mulf %161, %63 : vector<1x128xf32>
    %163 = arith.addf %160, %162 : vector<1x128xf32>
    %164 = vector.broadcast %26 : f32 to vector<1x128xf32>
    %165 = arith.mulf %164, %74 : vector<1x128xf32>
    %166 = arith.addf %163, %165 : vector<1x128xf32>
    %167 = vector.broadcast %29 : f32 to vector<1x128xf32>
    %168 = arith.addf %166, %167 : vector<1x128xf32>
    %169 = math.tanh %168 : vector<1x128xf32>
    %c2_6 = arith.constant 2 : index
    %c0_7 = arith.constant 0 : index
    %c0_8 = arith.constant 0 : index
    %170 = vector.load %arg1[%c2_6, %c0_7, %c0_8] : memref<8x3x128xf32, #tpu.memory_space<vmem>>, vector<1x3x128xf32>
    %171 = vector.shape_cast %170 : vector<1x3x128xf32> to vector<3x128xf32>
    %172 = vector.extract_strided_slice %171 {offsets = [0, 0], sizes = [1, 128], strides = [1, 1]} : vector<3x128xf32> to vector<1x128xf32>
    %173 = vector.broadcast %0 : f32 to vector<1x128xf32>
    %174 = arith.mulf %173, %87 : vector<1x128xf32>
    %175 = arith.addf %172, %174 : vector<1x128xf32>
    %176 = vector.broadcast %1 : f32 to vector<1x128xf32>
    %177 = arith.mulf %176, %98 : vector<1x128xf32>
    %178 = arith.addf %175, %177 : vector<1x128xf32>
    %179 = vector.broadcast %2 : f32 to vector<1x128xf32>
    %180 = arith.mulf %179, %109 : vector<1x128xf32>
    %181 = arith.addf %178, %180 : vector<1x128xf32>
    %182 = math.tanh %181 : vector<1x128xf32>
    %183 = vector.extract_strided_slice %171 {offsets = [1, 0], sizes = [1, 128], strides = [1, 1]} : vector<3x128xf32> to vector<1x128xf32>
    %184 = vector.broadcast %3 : f32 to vector<1x128xf32>
    %185 = arith.mulf %184, %87 : vector<1x128xf32>
    %186 = arith.addf %183, %185 : vector<1x128xf32>
    %187 = vector.broadcast %4 : f32 to vector<1x128xf32>
    %188 = arith.mulf %187, %98 : vector<1x128xf32>
    %189 = arith.addf %186, %188 : vector<1x128xf32>
    %190 = vector.broadcast %5 : f32 to vector<1x128xf32>
    %191 = arith.mulf %190, %109 : vector<1x128xf32>
    %192 = arith.addf %189, %191 : vector<1x128xf32>
    %193 = math.tanh %192 : vector<1x128xf32>
    %194 = vector.extract_strided_slice %171 {offsets = [2, 0], sizes = [1, 128], strides = [1, 1]} : vector<3x128xf32> to vector<1x128xf32>
    %195 = vector.broadcast %6 : f32 to vector<1x128xf32>
    %196 = arith.mulf %195, %87 : vector<1x128xf32>
    %197 = arith.addf %194, %196 : vector<1x128xf32>
    %198 = vector.broadcast %7 : f32 to vector<1x128xf32>
    %199 = arith.mulf %198, %98 : vector<1x128xf32>
    %200 = arith.addf %197, %199 : vector<1x128xf32>
    %201 = vector.broadcast %8 : f32 to vector<1x128xf32>
    %202 = arith.mulf %201, %109 : vector<1x128xf32>
    %203 = arith.addf %200, %202 : vector<1x128xf32>
    %204 = math.tanh %203 : vector<1x128xf32>
    %205 = vector.broadcast %9 : f32 to vector<1x128xf32>
    %206 = arith.mulf %205, %182 : vector<1x128xf32>
    %207 = vector.broadcast %10 : f32 to vector<1x128xf32>
    %208 = arith.mulf %207, %193 : vector<1x128xf32>
    %209 = arith.addf %206, %208 : vector<1x128xf32>
    %210 = vector.broadcast %11 : f32 to vector<1x128xf32>
    %211 = arith.mulf %210, %204 : vector<1x128xf32>
    %212 = arith.addf %209, %211 : vector<1x128xf32>
    %213 = vector.broadcast %18 : f32 to vector<1x128xf32>
    %214 = arith.mulf %213, %129 : vector<1x128xf32>
    %215 = arith.addf %212, %214 : vector<1x128xf32>
    %216 = vector.broadcast %19 : f32 to vector<1x128xf32>
    %217 = arith.mulf %216, %149 : vector<1x128xf32>
    %218 = arith.addf %215, %217 : vector<1x128xf32>
    %219 = vector.broadcast %20 : f32 to vector<1x128xf32>
    %220 = arith.mulf %219, %169 : vector<1x128xf32>
    %221 = arith.addf %218, %220 : vector<1x128xf32>
    %222 = vector.broadcast %27 : f32 to vector<1x128xf32>
    %223 = arith.addf %221, %222 : vector<1x128xf32>
    %224 = math.tanh %223 : vector<1x128xf32>
    %225 = vector.broadcast %12 : f32 to vector<1x128xf32>
    %226 = arith.mulf %225, %182 : vector<1x128xf32>
    %227 = vector.broadcast %13 : f32 to vector<1x128xf32>
    %228 = arith.mulf %227, %193 : vector<1x128xf32>
    %229 = arith.addf %226, %228 : vector<1x128xf32>
    %230 = vector.broadcast %14 : f32 to vector<1x128xf32>
    %231 = arith.mulf %230, %204 : vector<1x128xf32>
    %232 = arith.addf %229, %231 : vector<1x128xf32>
    %233 = vector.broadcast %21 : f32 to vector<1x128xf32>
    %234 = arith.mulf %233, %129 : vector<1x128xf32>
    %235 = arith.addf %232, %234 : vector<1x128xf32>
    %236 = vector.broadcast %22 : f32 to vector<1x128xf32>
    %237 = arith.mulf %236, %149 : vector<1x128xf32>
    %238 = arith.addf %235, %237 : vector<1x128xf32>
    %239 = vector.broadcast %23 : f32 to vector<1x128xf32>
    %240 = arith.mulf %239, %169 : vector<1x128xf32>
    %241 = arith.addf %238, %240 : vector<1x128xf32>
    %242 = vector.broadcast %28 : f32 to vector<1x128xf32>
    %243 = arith.addf %241, %242 : vector<1x128xf32>
    %244 = math.tanh %243 : vector<1x128xf32>
    %245 = vector.broadcast %15 : f32 to vector<1x128xf32>
    %246 = arith.mulf %245, %182 : vector<1x128xf32>
    %247 = vector.broadcast %16 : f32 to vector<1x128xf32>
    %248 = arith.mulf %247, %193 : vector<1x128xf32>
    %249 = arith.addf %246, %248 : vector<1x128xf32>
    %250 = vector.broadcast %17 : f32 to vector<1x128xf32>
    %251 = arith.mulf %250, %204 : vector<1x128xf32>
    %252 = arith.addf %249, %251 : vector<1x128xf32>
    %253 = vector.broadcast %24 : f32 to vector<1x128xf32>
    %254 = arith.mulf %253, %129 : vector<1x128xf32>
    %255 = arith.addf %252, %254 : vector<1x128xf32>
    %256 = vector.broadcast %25 : f32 to vector<1x128xf32>
    %257 = arith.mulf %256, %149 : vector<1x128xf32>
    %258 = arith.addf %255, %257 : vector<1x128xf32>
    %259 = vector.broadcast %26 : f32 to vector<1x128xf32>
    %260 = arith.mulf %259, %169 : vector<1x128xf32>
    %261 = arith.addf %258, %260 : vector<1x128xf32>
    %262 = vector.broadcast %29 : f32 to vector<1x128xf32>
    %263 = arith.addf %261, %262 : vector<1x128xf32>
    %264 = math.tanh %263 : vector<1x128xf32>
    %c3_9 = arith.constant 3 : index
    %c0_10 = arith.constant 0 : index
    %c0_11 = arith.constant 0 : index
    %265 = vector.load %arg1[%c3_9, %c0_10, %c0_11] : memref<8x3x128xf32, #tpu.memory_space<vmem>>, vector<1x3x128xf32>
    %266 = vector.shape_cast %265 : vector<1x3x128xf32> to vector<3x128xf32>
    %267 = vector.extract_strided_slice %266 {offsets = [0, 0], sizes = [1, 128], strides = [1, 1]} : vector<3x128xf32> to vector<1x128xf32>
    %268 = vector.broadcast %0 : f32 to vector<1x128xf32>
    %269 = arith.mulf %268, %182 : vector<1x128xf32>
    %270 = arith.addf %267, %269 : vector<1x128xf32>
    %271 = vector.broadcast %1 : f32 to vector<1x128xf32>
    %272 = arith.mulf %271, %193 : vector<1x128xf32>
    %273 = arith.addf %270, %272 : vector<1x128xf32>
    %274 = vector.broadcast %2 : f32 to vector<1x128xf32>
    %275 = arith.mulf %274, %204 : vector<1x128xf32>
    %276 = arith.addf %273, %275 : vector<1x128xf32>
    %277 = math.tanh %276 : vector<1x128xf32>
    %278 = vector.extract_strided_slice %266 {offsets = [1, 0], sizes = [1, 128], strides = [1, 1]} : vector<3x128xf32> to vector<1x128xf32>
    %279 = vector.broadcast %3 : f32 to vector<1x128xf32>
    %280 = arith.mulf %279, %182 : vector<1x128xf32>
    %281 = arith.addf %278, %280 : vector<1x128xf32>
    %282 = vector.broadcast %4 : f32 to vector<1x128xf32>
    %283 = arith.mulf %282, %193 : vector<1x128xf32>
    %284 = arith.addf %281, %283 : vector<1x128xf32>
    %285 = vector.broadcast %5 : f32 to vector<1x128xf32>
    %286 = arith.mulf %285, %204 : vector<1x128xf32>
    %287 = arith.addf %284, %286 : vector<1x128xf32>
    %288 = math.tanh %287 : vector<1x128xf32>
    %289 = vector.extract_strided_slice %266 {offsets = [2, 0], sizes = [1, 128], strides = [1, 1]} : vector<3x128xf32> to vector<1x128xf32>
    %290 = vector.broadcast %6 : f32 to vector<1x128xf32>
    %291 = arith.mulf %290, %182 : vector<1x128xf32>
    %292 = arith.addf %289, %291 : vector<1x128xf32>
    %293 = vector.broadcast %7 : f32 to vector<1x128xf32>
    %294 = arith.mulf %293, %193 : vector<1x128xf32>
    %295 = arith.addf %292, %294 : vector<1x128xf32>
    %296 = vector.broadcast %8 : f32 to vector<1x128xf32>
    %297 = arith.mulf %296, %204 : vector<1x128xf32>
    %298 = arith.addf %295, %297 : vector<1x128xf32>
    %299 = math.tanh %298 : vector<1x128xf32>
    %300 = vector.broadcast %9 : f32 to vector<1x128xf32>
    %301 = arith.mulf %300, %277 : vector<1x128xf32>
    %302 = vector.broadcast %10 : f32 to vector<1x128xf32>
    %303 = arith.mulf %302, %288 : vector<1x128xf32>
    %304 = arith.addf %301, %303 : vector<1x128xf32>
    %305 = vector.broadcast %11 : f32 to vector<1x128xf32>
    %306 = arith.mulf %305, %299 : vector<1x128xf32>
    %307 = arith.addf %304, %306 : vector<1x128xf32>
    %308 = vector.broadcast %18 : f32 to vector<1x128xf32>
    %309 = arith.mulf %308, %224 : vector<1x128xf32>
    %310 = arith.addf %307, %309 : vector<1x128xf32>
    %311 = vector.broadcast %19 : f32 to vector<1x128xf32>
    %312 = arith.mulf %311, %244 : vector<1x128xf32>
    %313 = arith.addf %310, %312 : vector<1x128xf32>
    %314 = vector.broadcast %20 : f32 to vector<1x128xf32>
    %315 = arith.mulf %314, %264 : vector<1x128xf32>
    %316 = arith.addf %313, %315 : vector<1x128xf32>
    %317 = vector.broadcast %27 : f32 to vector<1x128xf32>
    %318 = arith.addf %316, %317 : vector<1x128xf32>
    %319 = math.tanh %318 : vector<1x128xf32>
    %320 = vector.broadcast %12 : f32 to vector<1x128xf32>
    %321 = arith.mulf %320, %277 : vector<1x128xf32>
    %322 = vector.broadcast %13 : f32 to vector<1x128xf32>
    %323 = arith.mulf %322, %288 : vector<1x128xf32>
    %324 = arith.addf %321, %323 : vector<1x128xf32>
    %325 = vector.broadcast %14 : f32 to vector<1x128xf32>
    %326 = arith.mulf %325, %299 : vector<1x128xf32>
    %327 = arith.addf %324, %326 : vector<1x128xf32>
    %328 = vector.broadcast %21 : f32 to vector<1x128xf32>
    %329 = arith.mulf %328, %224 : vector<1x128xf32>
    %330 = arith.addf %327, %329 : vector<1x128xf32>
    %331 = vector.broadcast %22 : f32 to vector<1x128xf32>
    %332 = arith.mulf %331, %244 : vector<1x128xf32>
    %333 = arith.addf %330, %332 : vector<1x128xf32>
    %334 = vector.broadcast %23 : f32 to vector<1x128xf32>
    %335 = arith.mulf %334, %264 : vector<1x128xf32>
    %336 = arith.addf %333, %335 : vector<1x128xf32>
    %337 = vector.broadcast %28 : f32 to vector<1x128xf32>
    %338 = arith.addf %336, %337 : vector<1x128xf32>
    %339 = math.tanh %338 : vector<1x128xf32>
    %340 = vector.broadcast %15 : f32 to vector<1x128xf32>
    %341 = arith.mulf %340, %277 : vector<1x128xf32>
    %342 = vector.broadcast %16 : f32 to vector<1x128xf32>
    %343 = arith.mulf %342, %288 : vector<1x128xf32>
    %344 = arith.addf %341, %343 : vector<1x128xf32>
    %345 = vector.broadcast %17 : f32 to vector<1x128xf32>
    %346 = arith.mulf %345, %299 : vector<1x128xf32>
    %347 = arith.addf %344, %346 : vector<1x128xf32>
    %348 = vector.broadcast %24 : f32 to vector<1x128xf32>
    %349 = arith.mulf %348, %224 : vector<1x128xf32>
    %350 = arith.addf %347, %349 : vector<1x128xf32>
    %351 = vector.broadcast %25 : f32 to vector<1x128xf32>
    %352 = arith.mulf %351, %244 : vector<1x128xf32>
    %353 = arith.addf %350, %352 : vector<1x128xf32>
    %354 = vector.broadcast %26 : f32 to vector<1x128xf32>
    %355 = arith.mulf %354, %264 : vector<1x128xf32>
    %356 = arith.addf %353, %355 : vector<1x128xf32>
    %357 = vector.broadcast %29 : f32 to vector<1x128xf32>
    %358 = arith.addf %356, %357 : vector<1x128xf32>
    %359 = math.tanh %358 : vector<1x128xf32>
    %c4_12 = arith.constant 4 : index
    %c0_13 = arith.constant 0 : index
    %c0_14 = arith.constant 0 : index
    %360 = vector.load %arg1[%c4_12, %c0_13, %c0_14] : memref<8x3x128xf32, #tpu.memory_space<vmem>>, vector<1x3x128xf32>
    %361 = vector.shape_cast %360 : vector<1x3x128xf32> to vector<3x128xf32>
    %362 = vector.extract_strided_slice %361 {offsets = [0, 0], sizes = [1, 128], strides = [1, 1]} : vector<3x128xf32> to vector<1x128xf32>
    %363 = vector.broadcast %0 : f32 to vector<1x128xf32>
    %364 = arith.mulf %363, %277 : vector<1x128xf32>
    %365 = arith.addf %362, %364 : vector<1x128xf32>
    %366 = vector.broadcast %1 : f32 to vector<1x128xf32>
    %367 = arith.mulf %366, %288 : vector<1x128xf32>
    %368 = arith.addf %365, %367 : vector<1x128xf32>
    %369 = vector.broadcast %2 : f32 to vector<1x128xf32>
    %370 = arith.mulf %369, %299 : vector<1x128xf32>
    %371 = arith.addf %368, %370 : vector<1x128xf32>
    %372 = math.tanh %371 : vector<1x128xf32>
    %373 = vector.extract_strided_slice %361 {offsets = [1, 0], sizes = [1, 128], strides = [1, 1]} : vector<3x128xf32> to vector<1x128xf32>
    %374 = vector.broadcast %3 : f32 to vector<1x128xf32>
    %375 = arith.mulf %374, %277 : vector<1x128xf32>
    %376 = arith.addf %373, %375 : vector<1x128xf32>
    %377 = vector.broadcast %4 : f32 to vector<1x128xf32>
    %378 = arith.mulf %377, %288 : vector<1x128xf32>
    %379 = arith.addf %376, %378 : vector<1x128xf32>
    %380 = vector.broadcast %5 : f32 to vector<1x128xf32>
    %381 = arith.mulf %380, %299 : vector<1x128xf32>
    %382 = arith.addf %379, %381 : vector<1x128xf32>
    %383 = math.tanh %382 : vector<1x128xf32>
    %384 = vector.extract_strided_slice %361 {offsets = [2, 0], sizes = [1, 128], strides = [1, 1]} : vector<3x128xf32> to vector<1x128xf32>
    %385 = vector.broadcast %6 : f32 to vector<1x128xf32>
    %386 = arith.mulf %385, %277 : vector<1x128xf32>
    %387 = arith.addf %384, %386 : vector<1x128xf32>
    %388 = vector.broadcast %7 : f32 to vector<1x128xf32>
    %389 = arith.mulf %388, %288 : vector<1x128xf32>
    %390 = arith.addf %387, %389 : vector<1x128xf32>
    %391 = vector.broadcast %8 : f32 to vector<1x128xf32>
    %392 = arith.mulf %391, %299 : vector<1x128xf32>
    %393 = arith.addf %390, %392 : vector<1x128xf32>
    %394 = math.tanh %393 : vector<1x128xf32>
    %395 = vector.broadcast %9 : f32 to vector<1x128xf32>
    %396 = arith.mulf %395, %372 : vector<1x128xf32>
    %397 = vector.broadcast %10 : f32 to vector<1x128xf32>
    %398 = arith.mulf %397, %383 : vector<1x128xf32>
    %399 = arith.addf %396, %398 : vector<1x128xf32>
    %400 = vector.broadcast %11 : f32 to vector<1x128xf32>
    %401 = arith.mulf %400, %394 : vector<1x128xf32>
    %402 = arith.addf %399, %401 : vector<1x128xf32>
    %403 = vector.broadcast %18 : f32 to vector<1x128xf32>
    %404 = arith.mulf %403, %319 : vector<1x128xf32>
    %405 = arith.addf %402, %404 : vector<1x128xf32>
    %406 = vector.broadcast %19 : f32 to vector<1x128xf32>
    %407 = arith.mulf %406, %339 : vector<1x128xf32>
    %408 = arith.addf %405, %407 : vector<1x128xf32>
    %409 = vector.broadcast %20 : f32 to vector<1x128xf32>
    %410 = arith.mulf %409, %359 : vector<1x128xf32>
    %411 = arith.addf %408, %410 : vector<1x128xf32>
    %412 = vector.broadcast %27 : f32 to vector<1x128xf32>
    %413 = arith.addf %411, %412 : vector<1x128xf32>
    %414 = math.tanh %413 : vector<1x128xf32>
    %415 = vector.broadcast %12 : f32 to vector<1x128xf32>
    %416 = arith.mulf %415, %372 : vector<1x128xf32>
    %417 = vector.broadcast %13 : f32 to vector<1x128xf32>
    %418 = arith.mulf %417, %383 : vector<1x128xf32>
    %419 = arith.addf %416, %418 : vector<1x128xf32>
    %420 = vector.broadcast %14 : f32 to vector<1x128xf32>
    %421 = arith.mulf %420, %394 : vector<1x128xf32>
    %422 = arith.addf %419, %421 : vector<1x128xf32>
    %423 = vector.broadcast %21 : f32 to vector<1x128xf32>
    %424 = arith.mulf %423, %319 : vector<1x128xf32>
    %425 = arith.addf %422, %424 : vector<1x128xf32>
    %426 = vector.broadcast %22 : f32 to vector<1x128xf32>
    %427 = arith.mulf %426, %339 : vector<1x128xf32>
    %428 = arith.addf %425, %427 : vector<1x128xf32>
    %429 = vector.broadcast %23 : f32 to vector<1x128xf32>
    %430 = arith.mulf %429, %359 : vector<1x128xf32>
    %431 = arith.addf %428, %430 : vector<1x128xf32>
    %432 = vector.broadcast %28 : f32 to vector<1x128xf32>
    %433 = arith.addf %431, %432 : vector<1x128xf32>
    %434 = math.tanh %433 : vector<1x128xf32>
    %435 = vector.broadcast %15 : f32 to vector<1x128xf32>
    %436 = arith.mulf %435, %372 : vector<1x128xf32>
    %437 = vector.broadcast %16 : f32 to vector<1x128xf32>
    %438 = arith.mulf %437, %383 : vector<1x128xf32>
    %439 = arith.addf %436, %438 : vector<1x128xf32>
    %440 = vector.broadcast %17 : f32 to vector<1x128xf32>
    %441 = arith.mulf %440, %394 : vector<1x128xf32>
    %442 = arith.addf %439, %441 : vector<1x128xf32>
    %443 = vector.broadcast %24 : f32 to vector<1x128xf32>
    %444 = arith.mulf %443, %319 : vector<1x128xf32>
    %445 = arith.addf %442, %444 : vector<1x128xf32>
    %446 = vector.broadcast %25 : f32 to vector<1x128xf32>
    %447 = arith.mulf %446, %339 : vector<1x128xf32>
    %448 = arith.addf %445, %447 : vector<1x128xf32>
    %449 = vector.broadcast %26 : f32 to vector<1x128xf32>
    %450 = arith.mulf %449, %359 : vector<1x128xf32>
    %451 = arith.addf %448, %450 : vector<1x128xf32>
    %452 = vector.broadcast %29 : f32 to vector<1x128xf32>
    %453 = arith.addf %451, %452 : vector<1x128xf32>
    %454 = math.tanh %453 : vector<1x128xf32>
    %c5_15 = arith.constant 5 : index
    %c0_16 = arith.constant 0 : index
    %c0_17 = arith.constant 0 : index
    %455 = vector.load %arg1[%c5_15, %c0_16, %c0_17] : memref<8x3x128xf32, #tpu.memory_space<vmem>>, vector<1x3x128xf32>
    %456 = vector.shape_cast %455 : vector<1x3x128xf32> to vector<3x128xf32>
    %457 = vector.extract_strided_slice %456 {offsets = [0, 0], sizes = [1, 128], strides = [1, 1]} : vector<3x128xf32> to vector<1x128xf32>
    %458 = vector.broadcast %0 : f32 to vector<1x128xf32>
    %459 = arith.mulf %458, %372 : vector<1x128xf32>
    %460 = arith.addf %457, %459 : vector<1x128xf32>
    %461 = vector.broadcast %1 : f32 to vector<1x128xf32>
    %462 = arith.mulf %461, %383 : vector<1x128xf32>
    %463 = arith.addf %460, %462 : vector<1x128xf32>
    %464 = vector.broadcast %2 : f32 to vector<1x128xf32>
    %465 = arith.mulf %464, %394 : vector<1x128xf32>
    %466 = arith.addf %463, %465 : vector<1x128xf32>
    %467 = math.tanh %466 : vector<1x128xf32>
    %468 = vector.extract_strided_slice %456 {offsets = [1, 0], sizes = [1, 128], strides = [1, 1]} : vector<3x128xf32> to vector<1x128xf32>
    %469 = vector.broadcast %3 : f32 to vector<1x128xf32>
    %470 = arith.mulf %469, %372 : vector<1x128xf32>
    %471 = arith.addf %468, %470 : vector<1x128xf32>
    %472 = vector.broadcast %4 : f32 to vector<1x128xf32>
    %473 = arith.mulf %472, %383 : vector<1x128xf32>
    %474 = arith.addf %471, %473 : vector<1x128xf32>
    %475 = vector.broadcast %5 : f32 to vector<1x128xf32>
    %476 = arith.mulf %475, %394 : vector<1x128xf32>
    %477 = arith.addf %474, %476 : vector<1x128xf32>
    %478 = math.tanh %477 : vector<1x128xf32>
    %479 = vector.extract_strided_slice %456 {offsets = [2, 0], sizes = [1, 128], strides = [1, 1]} : vector<3x128xf32> to vector<1x128xf32>
    %480 = vector.broadcast %6 : f32 to vector<1x128xf32>
    %481 = arith.mulf %480, %372 : vector<1x128xf32>
    %482 = arith.addf %479, %481 : vector<1x128xf32>
    %483 = vector.broadcast %7 : f32 to vector<1x128xf32>
    %484 = arith.mulf %483, %383 : vector<1x128xf32>
    %485 = arith.addf %482, %484 : vector<1x128xf32>
    %486 = vector.broadcast %8 : f32 to vector<1x128xf32>
    %487 = arith.mulf %486, %394 : vector<1x128xf32>
    %488 = arith.addf %485, %487 : vector<1x128xf32>
    %489 = math.tanh %488 : vector<1x128xf32>
    %490 = vector.broadcast %9 : f32 to vector<1x128xf32>
    %491 = arith.mulf %490, %467 : vector<1x128xf32>
    %492 = vector.broadcast %10 : f32 to vector<1x128xf32>
    %493 = arith.mulf %492, %478 : vector<1x128xf32>
    %494 = arith.addf %491, %493 : vector<1x128xf32>
    %495 = vector.broadcast %11 : f32 to vector<1x128xf32>
    %496 = arith.mulf %495, %489 : vector<1x128xf32>
    %497 = arith.addf %494, %496 : vector<1x128xf32>
    %498 = vector.broadcast %18 : f32 to vector<1x128xf32>
    %499 = arith.mulf %498, %414 : vector<1x128xf32>
    %500 = arith.addf %497, %499 : vector<1x128xf32>
    %501 = vector.broadcast %19 : f32 to vector<1x128xf32>
    %502 = arith.mulf %501, %434 : vector<1x128xf32>
    %503 = arith.addf %500, %502 : vector<1x128xf32>
    %504 = vector.broadcast %20 : f32 to vector<1x128xf32>
    %505 = arith.mulf %504, %454 : vector<1x128xf32>
    %506 = arith.addf %503, %505 : vector<1x128xf32>
    %507 = vector.broadcast %27 : f32 to vector<1x128xf32>
    %508 = arith.addf %506, %507 : vector<1x128xf32>
    %509 = math.tanh %508 : vector<1x128xf32>
    %510 = vector.broadcast %12 : f32 to vector<1x128xf32>
    %511 = arith.mulf %510, %467 : vector<1x128xf32>
    %512 = vector.broadcast %13 : f32 to vector<1x128xf32>
    %513 = arith.mulf %512, %478 : vector<1x128xf32>
    %514 = arith.addf %511, %513 : vector<1x128xf32>
    %515 = vector.broadcast %14 : f32 to vector<1x128xf32>
    %516 = arith.mulf %515, %489 : vector<1x128xf32>
    %517 = arith.addf %514, %516 : vector<1x128xf32>
    %518 = vector.broadcast %21 : f32 to vector<1x128xf32>
    %519 = arith.mulf %518, %414 : vector<1x128xf32>
    %520 = arith.addf %517, %519 : vector<1x128xf32>
    %521 = vector.broadcast %22 : f32 to vector<1x128xf32>
    %522 = arith.mulf %521, %434 : vector<1x128xf32>
    %523 = arith.addf %520, %522 : vector<1x128xf32>
    %524 = vector.broadcast %23 : f32 to vector<1x128xf32>
    %525 = arith.mulf %524, %454 : vector<1x128xf32>
    %526 = arith.addf %523, %525 : vector<1x128xf32>
    %527 = vector.broadcast %28 : f32 to vector<1x128xf32>
    %528 = arith.addf %526, %527 : vector<1x128xf32>
    %529 = math.tanh %528 : vector<1x128xf32>
    %530 = vector.broadcast %15 : f32 to vector<1x128xf32>
    %531 = arith.mulf %530, %467 : vector<1x128xf32>
    %532 = vector.broadcast %16 : f32 to vector<1x128xf32>
    %533 = arith.mulf %532, %478 : vector<1x128xf32>
    %534 = arith.addf %531, %533 : vector<1x128xf32>
    %535 = vector.broadcast %17 : f32 to vector<1x128xf32>
    %536 = arith.mulf %535, %489 : vector<1x128xf32>
    %537 = arith.addf %534, %536 : vector<1x128xf32>
    %538 = vector.broadcast %24 : f32 to vector<1x128xf32>
    %539 = arith.mulf %538, %414 : vector<1x128xf32>
    %540 = arith.addf %537, %539 : vector<1x128xf32>
    %541 = vector.broadcast %25 : f32 to vector<1x128xf32>
    %542 = arith.mulf %541, %434 : vector<1x128xf32>
    %543 = arith.addf %540, %542 : vector<1x128xf32>
    %544 = vector.broadcast %26 : f32 to vector<1x128xf32>
    %545 = arith.mulf %544, %454 : vector<1x128xf32>
    %546 = arith.addf %543, %545 : vector<1x128xf32>
    %547 = vector.broadcast %29 : f32 to vector<1x128xf32>
    %548 = arith.addf %546, %547 : vector<1x128xf32>
    %549 = math.tanh %548 : vector<1x128xf32>
    %c6_18 = arith.constant 6 : index
    %c0_19 = arith.constant 0 : index
    %c0_20 = arith.constant 0 : index
    %550 = vector.load %arg1[%c6_18, %c0_19, %c0_20] : memref<8x3x128xf32, #tpu.memory_space<vmem>>, vector<1x3x128xf32>
    %551 = vector.shape_cast %550 : vector<1x3x128xf32> to vector<3x128xf32>
    %552 = vector.extract_strided_slice %551 {offsets = [0, 0], sizes = [1, 128], strides = [1, 1]} : vector<3x128xf32> to vector<1x128xf32>
    %553 = vector.broadcast %0 : f32 to vector<1x128xf32>
    %554 = arith.mulf %553, %467 : vector<1x128xf32>
    %555 = arith.addf %552, %554 : vector<1x128xf32>
    %556 = vector.broadcast %1 : f32 to vector<1x128xf32>
    %557 = arith.mulf %556, %478 : vector<1x128xf32>
    %558 = arith.addf %555, %557 : vector<1x128xf32>
    %559 = vector.broadcast %2 : f32 to vector<1x128xf32>
    %560 = arith.mulf %559, %489 : vector<1x128xf32>
    %561 = arith.addf %558, %560 : vector<1x128xf32>
    %562 = math.tanh %561 : vector<1x128xf32>
    %563 = vector.extract_strided_slice %551 {offsets = [1, 0], sizes = [1, 128], strides = [1, 1]} : vector<3x128xf32> to vector<1x128xf32>
    %564 = vector.broadcast %3 : f32 to vector<1x128xf32>
    %565 = arith.mulf %564, %467 : vector<1x128xf32>
    %566 = arith.addf %563, %565 : vector<1x128xf32>
    %567 = vector.broadcast %4 : f32 to vector<1x128xf32>
    %568 = arith.mulf %567, %478 : vector<1x128xf32>
    %569 = arith.addf %566, %568 : vector<1x128xf32>
    %570 = vector.broadcast %5 : f32 to vector<1x128xf32>
    %571 = arith.mulf %570, %489 : vector<1x128xf32>
    %572 = arith.addf %569, %571 : vector<1x128xf32>
    %573 = math.tanh %572 : vector<1x128xf32>
    %574 = vector.extract_strided_slice %551 {offsets = [2, 0], sizes = [1, 128], strides = [1, 1]} : vector<3x128xf32> to vector<1x128xf32>
    %575 = vector.broadcast %6 : f32 to vector<1x128xf32>
    %576 = arith.mulf %575, %467 : vector<1x128xf32>
    %577 = arith.addf %574, %576 : vector<1x128xf32>
    %578 = vector.broadcast %7 : f32 to vector<1x128xf32>
    %579 = arith.mulf %578, %478 : vector<1x128xf32>
    %580 = arith.addf %577, %579 : vector<1x128xf32>
    %581 = vector.broadcast %8 : f32 to vector<1x128xf32>
    %582 = arith.mulf %581, %489 : vector<1x128xf32>
    %583 = arith.addf %580, %582 : vector<1x128xf32>
    %584 = math.tanh %583 : vector<1x128xf32>
    %585 = vector.broadcast %9 : f32 to vector<1x128xf32>
    %586 = arith.mulf %585, %562 : vector<1x128xf32>
    %587 = vector.broadcast %10 : f32 to vector<1x128xf32>
    %588 = arith.mulf %587, %573 : vector<1x128xf32>
    %589 = arith.addf %586, %588 : vector<1x128xf32>
    %590 = vector.broadcast %11 : f32 to vector<1x128xf32>
    %591 = arith.mulf %590, %584 : vector<1x128xf32>
    %592 = arith.addf %589, %591 : vector<1x128xf32>
    %593 = vector.broadcast %18 : f32 to vector<1x128xf32>
    %594 = arith.mulf %593, %509 : vector<1x128xf32>
    %595 = arith.addf %592, %594 : vector<1x128xf32>
    %596 = vector.broadcast %19 : f32 to vector<1x128xf32>
    %597 = arith.mulf %596, %529 : vector<1x128xf32>
    %598 = arith.addf %595, %597 : vector<1x128xf32>
    %599 = vector.broadcast %20 : f32 to vector<1x128xf32>
    %600 = arith.mulf %599, %549 : vector<1x128xf32>
    %601 = arith.addf %598, %600 : vector<1x128xf32>
    %602 = vector.broadcast %27 : f32 to vector<1x128xf32>
    %603 = arith.addf %601, %602 : vector<1x128xf32>
    %604 = math.tanh %603 : vector<1x128xf32>
    %605 = vector.broadcast %12 : f32 to vector<1x128xf32>
    %606 = arith.mulf %605, %562 : vector<1x128xf32>
    %607 = vector.broadcast %13 : f32 to vector<1x128xf32>
    %608 = arith.mulf %607, %573 : vector<1x128xf32>
    %609 = arith.addf %606, %608 : vector<1x128xf32>
    %610 = vector.broadcast %14 : f32 to vector<1x128xf32>
    %611 = arith.mulf %610, %584 : vector<1x128xf32>
    %612 = arith.addf %609, %611 : vector<1x128xf32>
    %613 = vector.broadcast %21 : f32 to vector<1x128xf32>
    %614 = arith.mulf %613, %509 : vector<1x128xf32>
    %615 = arith.addf %612, %614 : vector<1x128xf32>
    %616 = vector.broadcast %22 : f32 to vector<1x128xf32>
    %617 = arith.mulf %616, %529 : vector<1x128xf32>
    %618 = arith.addf %615, %617 : vector<1x128xf32>
    %619 = vector.broadcast %23 : f32 to vector<1x128xf32>
    %620 = arith.mulf %619, %549 : vector<1x128xf32>
    %621 = arith.addf %618, %620 : vector<1x128xf32>
    %622 = vector.broadcast %28 : f32 to vector<1x128xf32>
    %623 = arith.addf %621, %622 : vector<1x128xf32>
    %624 = math.tanh %623 : vector<1x128xf32>
    %625 = vector.broadcast %15 : f32 to vector<1x128xf32>
    %626 = arith.mulf %625, %562 : vector<1x128xf32>
    %627 = vector.broadcast %16 : f32 to vector<1x128xf32>
    %628 = arith.mulf %627, %573 : vector<1x128xf32>
    %629 = arith.addf %626, %628 : vector<1x128xf32>
    %630 = vector.broadcast %17 : f32 to vector<1x128xf32>
    %631 = arith.mulf %630, %584 : vector<1x128xf32>
    %632 = arith.addf %629, %631 : vector<1x128xf32>
    %633 = vector.broadcast %24 : f32 to vector<1x128xf32>
    %634 = arith.mulf %633, %509 : vector<1x128xf32>
    %635 = arith.addf %632, %634 : vector<1x128xf32>
    %636 = vector.broadcast %25 : f32 to vector<1x128xf32>
    %637 = arith.mulf %636, %529 : vector<1x128xf32>
    %638 = arith.addf %635, %637 : vector<1x128xf32>
    %639 = vector.broadcast %26 : f32 to vector<1x128xf32>
    %640 = arith.mulf %639, %549 : vector<1x128xf32>
    %641 = arith.addf %638, %640 : vector<1x128xf32>
    %642 = vector.broadcast %29 : f32 to vector<1x128xf32>
    %643 = arith.addf %641, %642 : vector<1x128xf32>
    %644 = math.tanh %643 : vector<1x128xf32>
    %c7_21 = arith.constant 7 : index
    %c0_22 = arith.constant 0 : index
    %c0_23 = arith.constant 0 : index
    %645 = vector.load %arg1[%c7_21, %c0_22, %c0_23] : memref<8x3x128xf32, #tpu.memory_space<vmem>>, vector<1x3x128xf32>
    %646 = vector.shape_cast %645 : vector<1x3x128xf32> to vector<3x128xf32>
    %647 = vector.extract_strided_slice %646 {offsets = [0, 0], sizes = [1, 128], strides = [1, 1]} : vector<3x128xf32> to vector<1x128xf32>
    %648 = vector.broadcast %0 : f32 to vector<1x128xf32>
    %649 = arith.mulf %648, %562 : vector<1x128xf32>
    %650 = arith.addf %647, %649 : vector<1x128xf32>
    %651 = vector.broadcast %1 : f32 to vector<1x128xf32>
    %652 = arith.mulf %651, %573 : vector<1x128xf32>
    %653 = arith.addf %650, %652 : vector<1x128xf32>
    %654 = vector.broadcast %2 : f32 to vector<1x128xf32>
    %655 = arith.mulf %654, %584 : vector<1x128xf32>
    %656 = arith.addf %653, %655 : vector<1x128xf32>
    %657 = math.tanh %656 : vector<1x128xf32>
    %658 = vector.extract_strided_slice %646 {offsets = [1, 0], sizes = [1, 128], strides = [1, 1]} : vector<3x128xf32> to vector<1x128xf32>
    %659 = vector.broadcast %3 : f32 to vector<1x128xf32>
    %660 = arith.mulf %659, %562 : vector<1x128xf32>
    %661 = arith.addf %658, %660 : vector<1x128xf32>
    %662 = vector.broadcast %4 : f32 to vector<1x128xf32>
    %663 = arith.mulf %662, %573 : vector<1x128xf32>
    %664 = arith.addf %661, %663 : vector<1x128xf32>
    %665 = vector.broadcast %5 : f32 to vector<1x128xf32>
    %666 = arith.mulf %665, %584 : vector<1x128xf32>
    %667 = arith.addf %664, %666 : vector<1x128xf32>
    %668 = math.tanh %667 : vector<1x128xf32>
    %669 = vector.extract_strided_slice %646 {offsets = [2, 0], sizes = [1, 128], strides = [1, 1]} : vector<3x128xf32> to vector<1x128xf32>
    %670 = vector.broadcast %6 : f32 to vector<1x128xf32>
    %671 = arith.mulf %670, %562 : vector<1x128xf32>
    %672 = arith.addf %669, %671 : vector<1x128xf32>
    %673 = vector.broadcast %7 : f32 to vector<1x128xf32>
    %674 = arith.mulf %673, %573 : vector<1x128xf32>
    %675 = arith.addf %672, %674 : vector<1x128xf32>
    %676 = vector.broadcast %8 : f32 to vector<1x128xf32>
    %677 = arith.mulf %676, %584 : vector<1x128xf32>
    %678 = arith.addf %675, %677 : vector<1x128xf32>
    %679 = math.tanh %678 : vector<1x128xf32>
    %680 = vector.broadcast %9 : f32 to vector<1x128xf32>
    %681 = arith.mulf %680, %657 : vector<1x128xf32>
    %682 = vector.broadcast %10 : f32 to vector<1x128xf32>
    %683 = arith.mulf %682, %668 : vector<1x128xf32>
    %684 = arith.addf %681, %683 : vector<1x128xf32>
    %685 = vector.broadcast %11 : f32 to vector<1x128xf32>
    %686 = arith.mulf %685, %679 : vector<1x128xf32>
    %687 = arith.addf %684, %686 : vector<1x128xf32>
    %688 = vector.broadcast %18 : f32 to vector<1x128xf32>
    %689 = arith.mulf %688, %604 : vector<1x128xf32>
    %690 = arith.addf %687, %689 : vector<1x128xf32>
    %691 = vector.broadcast %19 : f32 to vector<1x128xf32>
    %692 = arith.mulf %691, %624 : vector<1x128xf32>
    %693 = arith.addf %690, %692 : vector<1x128xf32>
    %694 = vector.broadcast %20 : f32 to vector<1x128xf32>
    %695 = arith.mulf %694, %644 : vector<1x128xf32>
    %696 = arith.addf %693, %695 : vector<1x128xf32>
    %697 = vector.broadcast %27 : f32 to vector<1x128xf32>
    %698 = arith.addf %696, %697 : vector<1x128xf32>
    %699 = math.tanh %698 : vector<1x128xf32>
    %700 = vector.broadcast %12 : f32 to vector<1x128xf32>
    %701 = arith.mulf %700, %657 : vector<1x128xf32>
    %702 = vector.broadcast %13 : f32 to vector<1x128xf32>
    %703 = arith.mulf %702, %668 : vector<1x128xf32>
    %704 = arith.addf %701, %703 : vector<1x128xf32>
    %705 = vector.broadcast %14 : f32 to vector<1x128xf32>
    %706 = arith.mulf %705, %679 : vector<1x128xf32>
    %707 = arith.addf %704, %706 : vector<1x128xf32>
    %708 = vector.broadcast %21 : f32 to vector<1x128xf32>
    %709 = arith.mulf %708, %604 : vector<1x128xf32>
    %710 = arith.addf %707, %709 : vector<1x128xf32>
    %711 = vector.broadcast %22 : f32 to vector<1x128xf32>
    %712 = arith.mulf %711, %624 : vector<1x128xf32>
    %713 = arith.addf %710, %712 : vector<1x128xf32>
    %714 = vector.broadcast %23 : f32 to vector<1x128xf32>
    %715 = arith.mulf %714, %644 : vector<1x128xf32>
    %716 = arith.addf %713, %715 : vector<1x128xf32>
    %717 = vector.broadcast %28 : f32 to vector<1x128xf32>
    %718 = arith.addf %716, %717 : vector<1x128xf32>
    %719 = math.tanh %718 : vector<1x128xf32>
    %720 = vector.broadcast %15 : f32 to vector<1x128xf32>
    %721 = arith.mulf %720, %657 : vector<1x128xf32>
    %722 = vector.broadcast %16 : f32 to vector<1x128xf32>
    %723 = arith.mulf %722, %668 : vector<1x128xf32>
    %724 = arith.addf %721, %723 : vector<1x128xf32>
    %725 = vector.broadcast %17 : f32 to vector<1x128xf32>
    %726 = arith.mulf %725, %679 : vector<1x128xf32>
    %727 = arith.addf %724, %726 : vector<1x128xf32>
    %728 = vector.broadcast %24 : f32 to vector<1x128xf32>
    %729 = arith.mulf %728, %604 : vector<1x128xf32>
    %730 = arith.addf %727, %729 : vector<1x128xf32>
    %731 = vector.broadcast %25 : f32 to vector<1x128xf32>
    %732 = arith.mulf %731, %624 : vector<1x128xf32>
    %733 = arith.addf %730, %732 : vector<1x128xf32>
    %734 = vector.broadcast %26 : f32 to vector<1x128xf32>
    %735 = arith.mulf %734, %644 : vector<1x128xf32>
    %736 = arith.addf %733, %735 : vector<1x128xf32>
    %737 = vector.broadcast %29 : f32 to vector<1x128xf32>
    %738 = arith.addf %736, %737 : vector<1x128xf32>
    %739 = math.tanh %738 : vector<1x128xf32>
    %740 = vector.broadcast %30 : f32 to vector<1x128xf32>
    %741 = arith.mulf %740, %699 : vector<1x128xf32>
    %742 = vector.broadcast %31 : f32 to vector<1x128xf32>
    %743 = arith.mulf %742, %719 : vector<1x128xf32>
    %744 = arith.addf %741, %743 : vector<1x128xf32>
    %745 = vector.broadcast %32 : f32 to vector<1x128xf32>
    %746 = arith.mulf %745, %739 : vector<1x128xf32>
    %747 = arith.addf %744, %746 : vector<1x128xf32>
    %748 = vector.broadcast %33 : f32 to vector<1x128xf32>
    %749 = arith.addf %747, %748 : vector<1x128xf32>
    %c0_24 = arith.constant 0 : index
    %c0_25 = arith.constant 0 : index
    %750 = vector.load %arg3[%c0_24, %c0_25] : memref<1x128xf32, #tpu.memory_space<vmem>>, vector<1x128xf32>
    tpu.vector_store %arg3[%c0_24, %c0_25], %749 {strides = array<i32>} : memref<1x128xf32, #tpu.memory_space<vmem>>, vector<1x128xf32>,
    return
  }
  func.func @transform_0(%arg0: i32) -> (i32, i32, i32) {
    %c0_i32 = arith.constant 0 : i32
    %c0_i32_0 = arith.constant 0 : i32
    %c0_i32_1 = arith.constant 0 : i32
    return %c0_i32, %c0_i32_0, %arg0 : i32, i32, i32
  }
  func.func @transform_1(%arg0: i32) -> i32 {
    %c0_i32 = arith.constant 0 : i32
    %c0_i32_0 = arith.constant 0 : i32
    return %c0_i32 : i32
  }
  func.func @transform_2(%arg0: i32) -> (i32, i32) {
    %c0_i32 = arith.constant 0 : i32
    %c0_i32_0 = arith.constant 0 : i32
    return %c0_i32, %arg0 : i32, i32
  }
}

</mosaic_0001>

<bundles_post_ra>
// kernel: simple_rnn_forward.1
= control target key start
LH: loop header
LB: loop body
LE: loop exit
PB: predicated region body
PF: predicated region fallthrough
CT: control target
= control target key end

     0   :  { %7 = vsyncpa [#allocation3], 0  ;;  %s1349_s0 = inlined_call_operand.vmem [shape: f32[8,3,128], index: 0, kind: input, shape index: {}]   ;;  %s1350_s1 = inlined_call_operand.vmem [shape: f32[34], index: 1, kind: input, shape index: {}]   ;;  %s1351_s2 = inlined_call_operand.vmem [shape: f32[1,128], index: 2, kind: output, shape index: {}]  }
   0x1   :  { %s16_s11 = sshll.u32 %s1350_s1, 4  ;;  %s17_s11 = int_to_ptr.vmem [resolvable:$true] %s16_s11 }
   0x2   :  { %s964_s12 = scalar_lea.vmem %s17_s11, 16  ;;  %p969_p1 = scmp.lt.s32.totalorder %s17_s11, %s17_s11 }
   0x3   :  { %p965_p0 = scmp.ne.s32.totalorder %s17_s11, %s964_s12  ;;  %p970_p2 = scmp.lt.s32.totalorder %s964_s12, %s964_s12 }
   0x5   :  { %p971_p3 = por %p970_p2, %p969_p1 }
   0x7   :  { %p972_p4 = pnand %p971_p3, %p965_p0 }
   0x9   :  { %975 = shalt.err (!%p972_p4)
}
   0xa   :  { %s978_s13 = smov [#allocation2]  }
   0xb   :  { %19 = dma.vmem_to_smem %s17_s11, 16, %s978_s13, [#allocation3]  }
   0xc   :  { %976 = dma.done.wait [#allocation3], 16  }
   0xd   :  { %977 = vsyncadd [#allocation3], 4294967280 }
   0xe   :  { %23 = sfence }
   0xf   :  { %v58_v0 = vld [vmem:[%s1349_s0] sm:$0x7]  ;;  %s24_s16 = sld [smem:[#allocation2]]  ;;  %v864_v6 = vld [vmem:[%s1349_s0 + $0x4] sm:$0x7] }
  0x10   :  { %872 = vtanh.f32 %v58_v0  ;;  %s831_s1 = sld [smem:[#allocation2 + $0x1]] }
  0x11   :  { %s832_s17 = sld [smem:[#allocation2 + $0x2]] }
  0x12   :  { %s833_s18 = sld [smem:[#allocation2 + $0x3]] }
  0x13   :  { %s834_s19 = sld [smem:[#allocation2 + $0x4]] }
  0x14   :  { %s835_s20 = sld [smem:[#allocation2 + $0x5]] }
  0x15   :  { %s836_s21 = sld [smem:[#allocation2 + $0x6]]  ;;  %v1002_v1 = vstv %s24_s16 }
  0x16   :  { %s1000_s22 = sld [smem:[#allocation2 + $0x7]]  ;;  %v1004_v2 = vstv %s831_s1 }
  0x17   :  { %s839_s23 = sld [smem:[#allocation2 + $0x9]]  ;;  %v1006_v3 = vstv %s832_s17 }
  0x18   :  { %s840_s24 = sld [smem:[#allocation2 + $0xa]]  ;;  %1389 = vst [vmem:[#allocation5_spill] sm:$0xff] %v1006_v3  ;;  %v1008_v4 = vstv %s833_s18 }
  0x19   :  { %s841_s25 = sld [smem:[#allocation2 + $0xb]]  ;;  %v1025_v12 = vstv %s834_s19 }
  0x1a   :  { %s842_s26 = sld [smem:[#allocation2 + $0xc]]  ;;  %1390 = vst [vmem:[#allocation6_spill] sm:$0xff] %v1025_v12  ;;  %v1027_v13 = vstv %s835_s20 }
  0x1b   :  { %s843_s27 = sld [smem:[#allocation2 + $0xd]]  ;;  %v1031_v17 = vstv %s836_s21 }
  0x1c   :  { %s844_s28 = sld [smem:[#allocation2 + $0xe]]  ;;  %1391 = vst [vmem:[#allocation7_spill] sm:$0xff] %v1031_v17  ;;  %v1044_v25 = vstv %s1000_s22 }
  0x1d   :  { %v1010_v5 = vpop.eup %872  ;;  %s845_s3 = sld [smem:[#allocation2 + $0xf]]  ;;  %v1029_v14 = vstv %s839_s23  ;;  %1392 = vst [vmem:[#allocation8_spill] sm:$0xff] %v1044_v25 }
  0x1e   :  { %v114_v7 = vmul.f32 %v1010_v5, %v1002_v1  ;;  %v117_v8 = vmul.f32 %v1010_v5, %v1004_v2  ;;  %v123_v9 = vmul.f32 %v1010_v5, %v1006_v3  ;;  %s846_s4 = sld [smem:[#allocation2 + $0x10]]  ;;  %v1021_v10 = vstv %s840_s24 }
  0x1f   :  { %v130_v11 = vmul.f32 %v1010_v5, %v1008_v4  ;;  %s847_s5 = sld [smem:[#allocation2 + $0x11]]  ;;  %v63_v18 = vmul.f32 %v1010_v5, %v1021_v10  ;;  %v1037_v19 = vstv %s841_s25  ;;  %v136_v29 = vmul.f32 %v1010_v5, %v1025_v12 }
  0x20   :  { %v115_v15 = vadd.f32 %v864_v6, %v114_v7  ;;  %v119_v16 = vrot.slane %v117_v8, 1  ;;  %s1033_s6 = sld [smem:[#allocation2 + $0x8]]  ;;  %v125_v20 = vrot.slane %v123_v9, 2  ;;  %v1039_v22 = vstv %s842_s26 }
  0x21   :  { %v132_v21 = vrot.slane %v130_v11, 7  ;;  %v1041_v23 = vstv %s843_s27  ;;  %v61_v30 = vmul.f32 %v1010_v5, %v1029_v14  ;;  %v69_v31 = vmul.f32 %v1010_v5, %v1037_v19  ;;  %s1078_s7 = sld [smem:[#allocation2 + $0x12]] }
  0x22   :  { %v121_v24 = vadd.f32 %v119_v16, %v115_v15  ;;  %v80_v26 = vmul.f32 %v1010_v5, %v1041_v23  ;;  %v1048_v27 = vstv %s844_s28  ;;  %v65_v34 = vrot.slane %v63_v18, 1  ;;  %s857_s8 = sld [smem:[#allocation2 + $0x1b]] }
  0x23   :  { %v134_v28 = vadd.f32 %v864_v6, %v132_v21  ;;  %v1056_v32 = vstv %s845_s3  ;;  %v78_v35 = vmul.f32 %v1010_v5, %v1039_v22  ;;  %v86_v36 = vmul.f32 %v1010_v5, %v1048_v27  ;;  %s858_s9 = sld [smem:[#allocation2 + $0x1c]]  ;;  %v865_v21 = vld [vmem:[%s1349_s0 + $0x8] sm:$0x7] }
  0x24   :  { %v127_v33 = vadd.f32 %v125_v20, %v121_v24  ;;  %v1062_v37 = vstv %s846_s4  ;;  %v82_v38 = vrot.slane %v80_v26, 1  ;;  %v95_v39 = vmul.f32 %v1010_v5, %v1056_v32  ;;  %s859_s10 = sld [smem:[#allocation2 + $0x1d]] }
  0x25   :  { %v97_v40 = vmul.f32 %v1010_v5, %v1062_v37  ;;  %v1068_v41 = vstv %s847_s5  ;;  %v137_v43 = vadd.f32 %v136_v29, %v134_v28  ;;  %v139_v44 = vmul.f32 %v1010_v5, %v1027_v13  ;;  %s849_s11 = sld [smem:[#allocation2 + $0x13]] }
  0x26   :  { %1393 = vst [vmem:[#allocation9_spill] sm:$0xff] %v1068_v41  ;;  %v103_v42 = vmul.f32 %v1010_v5, %v1068_v41  ;;  %874 = vtanh.f32 %v127_v33  ;;  %v146_v46 = vmul.f32 %v1010_v5, %v1031_v17  ;;  %v152_v47 = vmul.f32 %v1010_v5, %v1044_v25  ;;  %s850_s12 = sld [smem:[#allocation2 + $0x14]] }
  0x27   :  { %v99_v45 = vrot.slane %v97_v40, 1  ;;  %v67_v48 = vadd.f32 %v65_v34, %v61_v30  ;;  %v71_v49 = vrot.slane %v69_v31, 2  ;;  %v141_v50 = vrot.slane %v139_v44, 1  ;;  %s851_s13 = sld [smem:[#allocation2 + $0x15]] }
  0x28   :  { %v1081_v51 = vstv %s1033_s6  ;;  %v84_v52 = vadd.f32 %v82_v38, %v78_v35  ;;  %v88_v53 = vrot.slane %v86_v36, 2  ;;  %v148_v54 = vrot.slane %v146_v46, 6  ;;  %s852_s14 = sld [smem:[#allocation2 + $0x16]] }
  0x29   :  { %v154_v55 = vrot.slane %v152_v47, 7  ;;  %v101_v56 = vadd.f32 %v99_v45, %v95_v39  ;;  %v105_v57 = vrot.slane %v103_v42, 2  ;;  %v143_v58 = vadd.f32 %v141_v50, %v137_v43  ;;  %s853_s15 = sld [smem:[#allocation2 + $0x17]] }
  0x2a   :  { %v150_v59 = vadd.f32 %v864_v6, %v148_v54  ;;  %v158_v60 = vmul.f32 %v1010_v5, %v1081_v51  ;;  %v73_v61 = vadd.f32 %v71_v49, %v67_v48  ;;  %v90_v62 = vadd.f32 %v88_v53, %v84_v52  ;;  %s1094_s16 = sld [smem:[#allocation2 + $0x18]] }
  0x2b   :  { %876 = vtanh.f32 %v143_v58  ;;  %v107_v0 = vadd.f32 %v105_v57, %v101_v56  ;;  %v1085_v7 = vstv %s857_s8  ;;  %v1088_v6 = vstv %s858_s9  ;;  %s1096_s1 = sld [smem:[#allocation2 + $0x19]] }
  0x2c   :  { %v156_v63 = vadd.f32 %v154_v55, %v150_v59  ;;  %v75_v9 = vadd.f32 %v1085_v7, %v73_v61  ;;  %v92_v5 = vadd.f32 %v1088_v6, %v90_v62  ;;  %v1091_v11 = vstv %s859_s10  ;;  %s1098_s17 = sld [smem:[#allocation2 + $0x1a]] }
  0x2d   :  { %v109_v15 = vadd.f32 %v1091_v11, %v107_v0  ;;  %v1106_v24 = vstv %s1078_s7  ;;  %v1108_v26 = vstv %s849_s11  ;;  %v1111_v30 = vstv %s850_s12  ;;  %s861_s30 = sld [smem:[#allocation2 + $0x1f]] }
  0x2e   :  { %v159_v8 = vadd.f32 %v158_v60, %v156_v63  ;;  %1394 = vst [vmem:[#allocation10_spill] sm:$0xff] %v1106_v24  ;;  %1395 = vst [vmem:[#allocation11_spill] sm:$0xff] %v1108_v26  ;;  %v1113_v31 = vstv %s851_s13  ;;  %v1115_v33 = vstv %s852_s14  ;;  %s862_s3 = sld [smem:[#allocation2 + $0x20]] }
  0x2f   :  { %1396 = vst [vmem:[#allocation12_spill] sm:$0xff] %v1111_v30  ;;  %1397 = vst [vmem:[#allocation13_spill] sm:$0xff] %v1113_v31  ;;  %v1117_v34 = vstv %s853_s15  ;;  %s863_s4 = sld [smem:[#allocation2 + $0x21]] }
  0x30   :  { %878 = vtanh.f32 %v159_v8  ;;  %1398 = vst [vmem:[#allocation14_spill] sm:$0xff] %v1115_v33  ;;  %1399 = vst [vmem:[#allocation15_spill] sm:$0xff] %v1117_v34  ;;  %v1129_v55 = vstv %s1094_s16 }
  0x31   :  { %880 = vtanh.f32 %v75_v9  ;;  %1400 = vst [vmem:[#allocation16_spill] sm:$0xff] %v1129_v55  ;;  %v1132_v56 = vstv %s1096_s1 }
  0x32   :  { %882 = vtanh.f32 %v92_v5  ;;  %1401 = vst [vmem:[#allocation17_spill] sm:$0xff] %v1132_v56  ;;  %v1135_v57 = vstv %s1098_s17 }
  0x33   :  { %v875_v16 = vpop.eup %874  ;;  %884 = vtanh.f32 %v109_v15  ;;  %1402 = vst [vmem:[#allocation18_spill] sm:$0xff] %v1135_v57 }
  0x34   :  { %v242_v18 = vmul.f32 %v875_v16, %v1008_v4  ;;  %v255_v20 = vmul.f32 %v875_v16, %v1031_v17  ;;  %v229_v28 = vmul.f32 %v875_v16, %v1002_v1  ;;  %v161_v36 = vmul.f32 %v875_v16, %v1029_v14 }
  0x35   :  { %v183_v38 = vmul.f32 %v875_v16, %v1039_v22  ;;  %v205_v46 = vmul.f32 %v875_v16, %v1056_v32 }
  0x36   :  { %v244_v29 = vrot.slane %v242_v18, 7  ;;  %v257_v40 = vrot.slane %v255_v20, 6  ;;  %v230_v47 = vadd.f32 %v865_v21, %v229_v28 }
  0x38   :  { %v877_v35 = vpop.eup %876  ;;  %v246_v39 = vadd.f32 %v865_v21, %v244_v29  ;;  %v259_v58 = vadd.f32 %v865_v21, %v257_v40 }
  0x39   :  { %v162_v42 = vmul.f32 %v877_v35, %v1021_v10  ;;  %v184_v43 = vmul.f32 %v877_v35, %v1041_v23  ;;  %v206_v44 = vmul.f32 %v877_v35, %v1062_v37  ;;  %v231_v45 = vmul.f32 %v877_v35, %v1004_v2 }
  0x3a   :  { %v247_v48 = vmul.f32 %v877_v35, %v1025_v12  ;;  %v260_v49 = vmul.f32 %v877_v35, %v1044_v25 }
  0x3b   :  { %v164_v50 = vrot.slane %v162_v42, 1  ;;  %v186_v52 = vrot.slane %v184_v43, 1  ;;  %v208_v53 = vrot.slane %v206_v44, 1  ;;  %v233_v54 = vrot.slane %v231_v45, 1 }
  0x3c   :  { %v248_v62 = vadd.f32 %v247_v48, %v246_v39  ;;  %v262_v63 = vrot.slane %v260_v49, 7 }
  0x3d   :  { %v879_v59 = vpop.eup %878  ;;  %v166_v60 = vadd.f32 %v164_v50, %v161_v36  ;;  %v188_v61 = vadd.f32 %v186_v52, %v183_v38  ;;  %v210_v20 = vadd.f32 %v208_v53, %v205_v46  ;;  %v235_v28 = vadd.f32 %v233_v54, %v230_v47 }
  0x3e   :  { %v881_v0 = vpop.eup %880  ;;  %v167_v8 = vmul.f32 %v879_v59, %v1037_v19  ;;  %v189_v9 = vmul.f32 %v879_v59, %v1048_v27  ;;  %v211_v5 = vmul.f32 %v879_v59, %v1068_v41  ;;  %v236_v15 = vmul.f32 %v879_v59, %v1006_v3 }
  0x3f   :  { %v883_v16 = vpop.eup %882  ;;  %v173_v18 = vmul.f32 %v881_v0, %v1106_v24  ;;  %v249_v21 = vmul.f32 %v879_v59, %v1027_v13  ;;  %v195_v38 = vmul.f32 %v881_v0, %v1113_v31  ;;  %v217_v39 = vmul.f32 %v881_v0, %v1129_v55 }
  0x40   :  { %v885_v29 = vpop.eup %884  ;;  %v169_v35 = vrot.slane %v167_v8, 2  ;;  %v191_v36 = vrot.slane %v189_v9, 2  ;;  %v176_v40 = vmul.f32 %v883_v16, %v1108_v26  ;;  %v198_v43 = vmul.f32 %v883_v16, %v1115_v33 }
  0x41   :  { %v179_v42 = vmul.f32 %v885_v29, %v1111_v30  ;;  %v213_v44 = vrot.slane %v211_v5, 2  ;;  %v220_v46 = vmul.f32 %v883_v16, %v1132_v56  ;;  %v238_v47 = vrot.slane %v236_v15, 2 }
  0x42   :  { %v171_v45 = vadd.f32 %v169_v35, %v166_v60  ;;  %v193_v48 = vadd.f32 %v191_v36, %v188_v61  ;;  %v251_v50 = vrot.slane %v249_v21, 1  ;;  %v264_v52 = vadd.f32 %v262_v63, %v259_v58 }
  0x43   :  { %v215_v49 = vadd.f32 %v213_v44, %v210_v20  ;;  %v265_v53 = vmul.f32 %v879_v59, %v1081_v51  ;;  %v201_v0 = vmul.f32 %v885_v29, %v1117_v34  ;;  %v240_v9 = vadd.f32 %v238_v47, %v235_v28  ;;  %v1158_v28 = vld [vmem:[%s1349_s0 + $0xc] sm:$0x7] }
  0x44   :  { %v174_v54 = vadd.f32 %v173_v18, %v171_v45  ;;  %v196_v8 = vadd.f32 %v195_v38, %v193_v48  ;;  %v223_v12 = vmul.f32 %v885_v29, %v1135_v57  ;;  %v253_v17 = vadd.f32 %v251_v50, %v248_v62 }
  0x45   :  { %v218_v25 = vadd.f32 %v217_v39, %v215_v49  ;;  %v266_v5 = vadd.f32 %v265_v53, %v264_v52  ;;  %886 = vtanh.f32 %v240_v9 }
  0x46   :  { %v177_v60 = vadd.f32 %v176_v40, %v174_v54  ;;  %v199_v61 = vadd.f32 %v198_v43, %v196_v8  ;;  %888 = vtanh.f32 %v253_v17 }
  0x47   :  { %v221_v16 = vadd.f32 %v220_v46, %v218_v25  ;;  %890 = vtanh.f32 %v266_v5 }
  0x48   :  { %v180_v15 = vadd.f32 %v179_v42, %v177_v60  ;;  %v202_v20 = vadd.f32 %v201_v0, %v199_v61 }
  0x49   :  { %v224_v58 = vadd.f32 %v223_v12, %v221_v16 }
  0x4a   :  { %v181_v59 = vadd.f32 %v180_v15, %v1085_v7  ;;  %v203_v63 = vadd.f32 %v202_v20, %v1088_v6 }
  0x4b   :  { %v225_v18 = vadd.f32 %v224_v58, %v1091_v11 }
  0x4c   :  { %892 = vtanh.f32 %v181_v59 }
  0x4d   :  { %894 = vtanh.f32 %v203_v63 }
  0x4e   :  { %896 = vtanh.f32 %v225_v18 }
  0x52   :  { %v887_v62 = vpop.eup %886 }
  0x53   :  { %v889_v17 = vpop.eup %888  ;;  %v268_v25 = vmul.f32 %v887_v62, %v1029_v14  ;;  %v287_v12 = vmul.f32 %v887_v62, %v1039_v22  ;;  %v306_v21 = vmul.f32 %v887_v62, %v1056_v32  ;;  %v327_v29 = vmul.f32 %v887_v62, %v1002_v1 }
  0x54   :  { %v891_v35 = vpop.eup %890  ;;  %v269_v36 = vmul.f32 %v889_v17, %v1021_v10  ;;  %v288_v38 = vmul.f32 %v889_v17, %v1041_v23  ;;  %v307_v39 = vmul.f32 %v889_v17, %v1062_v37  ;;  %v329_v40 = vmul.f32 %v889_v17, %v1004_v2 }
  0x55   :  { %v274_v42 = vmul.f32 %v891_v35, %v1037_v19  ;;  %v293_v43 = vmul.f32 %v891_v35, %v1048_v27  ;;  %v312_v44 = vmul.f32 %v891_v35, %v1068_v41  ;;  %v328_v45 = vadd.f32 %v1158_v28, %v327_v29 }
  0x56   :  { %v271_v48 = vrot.slane %v269_v36, 1  ;;  %v290_v46 = vrot.slane %v288_v38, 1  ;;  %v309_v47 = vrot.slane %v307_v39, 1  ;;  %v331_v49 = vrot.slane %v329_v40, 1 }
  0x57   :  { %v276_v50 = vrot.slane %v274_v42, 2  ;;  %v295_v52 = vrot.slane %v293_v43, 2  ;;  %v314_v53 = vrot.slane %v312_v44, 2  ;;  %v334_v54 = vmul.f32 %v891_v35, %v1006_v3 }
  0x58   :  { %v273_v0 = vadd.f32 %v271_v48, %v268_v25  ;;  %v292_v9 = vadd.f32 %v290_v46, %v287_v12  ;;  %v311_v5 = vadd.f32 %v309_v47, %v306_v21  ;;  %v333_v60 = vadd.f32 %v331_v49, %v328_v45  ;;  %v1403_v49 = vld [vmem:[#allocation7_spill] sm:$0xff] }
  0x59   :  { %v893_v8 = vpop.eup %892  ;;  %v336_v58 = vrot.slane %v334_v54, 2  ;;  %v340_v45 = vmul.f32 %v887_v62, %v1008_v4  ;;  %v347_v48 = vmul.f32 %v891_v35, %v1027_v13  ;;  %v1404_v54 = vld [vmem:[#allocation6_spill] sm:$0xff] }
  0x5a   :  { %v895_v61 = vpop.eup %894  ;;  %v279_v16 = vmul.f32 %v893_v8, %v1106_v24  ;;  %v298_v15 = vmul.f32 %v893_v8, %v1113_v31  ;;  %v317_v20 = vmul.f32 %v893_v8, %v1129_v55  ;;  %v278_v63 = vadd.f32 %v276_v50, %v273_v0  ;;  %v1405_v0 = vld [vmem:[#allocation8_spill] sm:$0xff] }
  0x5b   :  { %v897_v59 = vpop.eup %896  ;;  %v281_v18 = vmul.f32 %v895_v61, %v1108_v26  ;;  %v297_v29 = vadd.f32 %v295_v52, %v292_v9  ;;  %v300_v36 = vmul.f32 %v895_v61, %v1115_v33  ;;  %v316_v12 = vadd.f32 %v314_v53, %v311_v5 }
  0x5c   :  { %v283_v25 = vmul.f32 %v897_v59, %v1111_v30  ;;  %v319_v21 = vmul.f32 %v895_v61, %v1132_v56  ;;  %v280_v38 = vadd.f32 %v279_v16, %v278_v63  ;;  %v302_v40 = vmul.f32 %v897_v59, %v1117_v34 }
  0x5d   :  { %v299_v39 = vadd.f32 %v298_v15, %v297_v29  ;;  %v338_v42 = vadd.f32 %v336_v58, %v333_v60  ;;  %v318_v43 = vadd.f32 %v317_v20, %v316_v12  ;;  %v321_v44 = vmul.f32 %v897_v59, %v1135_v57 }
  0x5e   :  { %v282_v46 = vadd.f32 %v281_v18, %v280_v38  ;;  %v353_v50 = vmul.f32 %v887_v62, %v1403_v49  ;;  %v342_v53 = vrot.slane %v340_v45, 7  ;;  %v345_v8 = vmul.f32 %v889_v17, %v1404_v54 }
  0x5f   :  { %v301_v47 = vadd.f32 %v300_v36, %v299_v39  ;;  %898 = vtanh.f32 %v338_v42  ;;  %v320_v52 = vadd.f32 %v319_v21, %v318_v43  ;;  %v358_v9 = vmul.f32 %v889_v17, %v1405_v0 }
  0x60   :  { %v284_v5 = vadd.f32 %v283_v25, %v282_v46  ;;  %v355_v61 = vrot.slane %v353_v50, 6  ;;  %v344_v15 = vadd.f32 %v1158_v28, %v342_v53  ;;  %v349_v20 = vrot.slane %v347_v48, 1 }
  0x61   :  { %v303_v60 = vadd.f32 %v302_v40, %v301_v47  ;;  %v322_v16 = vadd.f32 %v321_v44, %v320_v52  ;;  %v360_v58 = vrot.slane %v358_v9, 7  ;;  %v363_v18 = vmul.f32 %v891_v35, %v1081_v51  ;;  %v867_v35 = vld [vmem:[%s1349_s0 + $0x10] sm:$0x7] }
  0x62   :  { %v285_v59 = vadd.f32 %v284_v5, %v1085_v7  ;;  %v357_v62 = vadd.f32 %v1158_v28, %v355_v61  ;;  %v346_v36 = vadd.f32 %v345_v8, %v344_v15 }
  0x63   :  { %v304_v63 = vadd.f32 %v303_v60, %v1088_v6  ;;  %v323_v29 = vadd.f32 %v322_v16, %v1091_v11 }
  0x64   :  { %900 = vtanh.f32 %v285_v59  ;;  %v362_v17 = vadd.f32 %v360_v58, %v357_v62  ;;  %v351_v25 = vadd.f32 %v349_v20, %v346_v36 }
  0x65   :  { %902 = vtanh.f32 %v304_v63 }
  0x66   :  { %904 = vtanh.f32 %v323_v29  ;;  %v364_v12 = vadd.f32 %v363_v18, %v362_v17 }
  0x67   :  { %906 = vtanh.f32 %v351_v25 }
  0x68   :  { %908 = vtanh.f32 %v364_v12 }
  0x6c   :  { %v899_v21 = vpop.eup %898 }
  0x6d   :  { %v438_v38 = vmul.f32 %v899_v21, %v1008_v4  ;;  %v451_v39 = vmul.f32 %v899_v21, %v1403_v49  ;;  %v425_v28 = vmul.f32 %v899_v21, %v1002_v1  ;;  %v366_v44 = vmul.f32 %v899_v21, %v1029_v14 }
  0x6e   :  { %v385_v45 = vmul.f32 %v899_v21, %v1039_v22  ;;  %v404_v46 = vmul.f32 %v899_v21, %v1056_v32 }
  0x6f   :  { %v440_v40 = vrot.slane %v438_v38, 7  ;;  %v453_v42 = vrot.slane %v451_v39, 6  ;;  %v426_v47 = vadd.f32 %v867_v35, %v425_v28 }
  0x71   :  { %v901_v43 = vpop.eup %900  ;;  %v442_v50 = vadd.f32 %v867_v35, %v440_v40  ;;  %v455_v52 = vadd.f32 %v867_v35, %v453_v42 }
  0x72   :  { %v903_v48 = vpop.eup %902  ;;  %v377_v8 = vmul.f32 %v901_v43, %v1106_v24  ;;  %v396_v5 = vmul.f32 %v901_v43, %v1113_v31  ;;  %v415_v60 = vmul.f32 %v901_v43, %v1129_v55 }
  0x73   :  { %v905_v53 = vpop.eup %904  ;;  %v379_v9 = vmul.f32 %v903_v48, %v1108_v26  ;;  %v398_v15 = vmul.f32 %v903_v48, %v1115_v33  ;;  %v417_v58 = vmul.f32 %v903_v48, %v1132_v56 }
  0x74   :  { %v907_v61 = vpop.eup %906  ;;  %v381_v16 = vmul.f32 %v905_v53, %v1111_v30  ;;  %v400_v20 = vmul.f32 %v905_v53, %v1117_v34  ;;  %v419_v30 = vmul.f32 %v905_v53, %v1135_v57 }
  0x75   :  { %v909_v59 = vpop.eup %908  ;;  %v367_v63 = vmul.f32 %v907_v61, %v1021_v10  ;;  %v386_v62 = vmul.f32 %v907_v61, %v1041_v23  ;;  %v405_v18 = vmul.f32 %v907_v61, %v1062_v37  ;;  %v427_v29 = vmul.f32 %v907_v61, %v1004_v2 }
  0x76   :  { %v372_v36 = vmul.f32 %v909_v59, %v1037_v19  ;;  %v391_v17 = vmul.f32 %v909_v59, %v1048_v27  ;;  %v410_v25 = vmul.f32 %v909_v59, %v1068_v41  ;;  %v432_v12 = vmul.f32 %v909_v59, %v1006_v3 }
  0x77   :  { %v369_v21 = vrot.slane %v367_v63, 1  ;;  %v388_v38 = vrot.slane %v386_v62, 1  ;;  %v407_v39 = vrot.slane %v405_v18, 1  ;;  %v429_v28 = vrot.slane %v427_v29, 1 }
  0x78   :  { %v374_v35 = vrot.slane %v372_v36, 2  ;;  %v393_v40 = vrot.slane %v391_v17, 2  ;;  %v412_v42 = vrot.slane %v410_v25, 2  ;;  %v434_v43 = vrot.slane %v432_v12, 2 }
  0x79   :  { %v371_v48 = vadd.f32 %v369_v21, %v366_v44  ;;  %v390_v56 = vadd.f32 %v388_v38, %v385_v45  ;;  %v409_v55 = vadd.f32 %v407_v39, %v404_v46  ;;  %v431_v34 = vadd.f32 %v429_v28, %v426_v47 }
  0x7a   :  { %v443_v33 = vmul.f32 %v907_v61, %v1404_v54  ;;  %v445_v26 = vmul.f32 %v909_v59, %v1027_v13  ;;  %v456_v31 = vmul.f32 %v907_v61, %v1405_v0  ;;  %v461_v44 = vmul.f32 %v909_v59, %v1081_v51 }
  0x7b   :  { %v376_v63 = vadd.f32 %v374_v35, %v371_v48  ;;  %v395_v62 = vadd.f32 %v393_v40, %v390_v56  ;;  %v414_v18 = vadd.f32 %v412_v42, %v409_v55  ;;  %v436_v29 = vadd.f32 %v434_v43, %v431_v34 }
  0x7c   :  { %v444_v36 = vadd.f32 %v443_v33, %v442_v50  ;;  %v447_v17 = vrot.slane %v445_v26, 1  ;;  %v458_v25 = vrot.slane %v456_v31, 7  ;;  %v868_v50 = vld [vmem:[%s1349_s0 + $0x14] sm:$0x7] }
  0x7d   :  { %v378_v45 = vadd.f32 %v377_v8, %v376_v63  ;;  %v397_v46 = vadd.f32 %v396_v5, %v395_v62  ;;  %v416_v47 = vadd.f32 %v415_v60, %v414_v18  ;;  %910 = vtanh.f32 %v436_v29 }
  0x7e   :  { %v449_v53 = vadd.f32 %v447_v17, %v444_v36  ;;  %v460_v12 = vadd.f32 %v458_v25, %v455_v52 }
  0x7f   :  { %v380_v21 = vadd.f32 %v379_v9, %v378_v45  ;;  %v399_v38 = vadd.f32 %v398_v15, %v397_v46  ;;  %v418_v39 = vadd.f32 %v417_v58, %v416_v47 }
  0x80   :  { %912 = vtanh.f32 %v449_v53  ;;  %v462_v61 = vadd.f32 %v461_v44, %v460_v12 }
  0x81   :  { %v382_v28 = vadd.f32 %v381_v16, %v380_v21  ;;  %v401_v56 = vadd.f32 %v400_v20, %v399_v38  ;;  %v420_v55 = vadd.f32 %v419_v30, %v418_v39 }
  0x82   :  { %914 = vtanh.f32 %v462_v61  ;;  %v1406_v61 = vld [vmem:[#allocation13_spill] sm:$0xff] }
  0x83   :  { %v383_v26 = vadd.f32 %v382_v28, %v1085_v7  ;;  %v402_v31 = vadd.f32 %v401_v56, %v1088_v6  ;;  %v421_v33 = vadd.f32 %v420_v55, %v1091_v11 }
  0x85   :  { %916 = vtanh.f32 %v383_v26 }
  0x86   :  { %918 = vtanh.f32 %v402_v31 }
  0x87   :  { %920 = vtanh.f32 %v421_v33  ;;  %v1407_v33 = vld [vmem:[#allocation11_spill] sm:$0xff] }
  0x8a   :  { %v911_v34 = vpop.eup %910 }
  0x8b   :  { %v523_v52 = vmul.f32 %v911_v34, %v1002_v1  ;;  %v536_v8 = vmul.f32 %v911_v34, %v1008_v4  ;;  %v549_v30 = vmul.f32 %v911_v34, %v1403_v49  ;;  %v464_v5 = vmul.f32 %v911_v34, %v1029_v14 }
  0x8c   :  { %v483_v60 = vmul.f32 %v911_v34, %v1039_v22  ;;  %v502_v16 = vmul.f32 %v911_v34, %v1056_v32 }
  0x8d   :  { %v913_v9 = vpop.eup %912  ;;  %v524_v15 = vadd.f32 %v868_v50, %v523_v52  ;;  %v538_v42 = vrot.slane %v536_v8, 7  ;;  %v551_v48 = vrot.slane %v549_v30, 6  ;;  %v1408_v8 = vld [vmem:[#allocation14_spill] sm:$0xff] }
  0x8e   :  { %v465_v20 = vmul.f32 %v913_v9, %v1021_v10  ;;  %v484_v58 = vmul.f32 %v913_v9, %v1041_v23  ;;  %v503_v59 = vmul.f32 %v913_v9, %v1062_v37  ;;  %v525_v35 = vmul.f32 %v913_v9, %v1004_v2 }
  0x8f   :  { %v915_v40 = vpop.eup %914  ;;  %v541_v43 = vmul.f32 %v913_v9, %v1404_v54  ;;  %v554_v63 = vmul.f32 %v913_v9, %v1405_v0  ;;  %v1409_v9 = vld [vmem:[#allocation12_spill] sm:$0xff]  ;;  %v553_v54 = vadd.f32 %v868_v50, %v551_v48 }
  0x90   :  { %v467_v62 = vrot.slane %v465_v20, 1  ;;  %v470_v18 = vmul.f32 %v915_v40, %v1037_v19  ;;  %v486_v29 = vrot.slane %v484_v58, 1  ;;  %v489_v36 = vmul.f32 %v915_v40, %v1048_v27 }
  0x91   :  { %v505_v17 = vrot.slane %v503_v59, 1  ;;  %v508_v25 = vmul.f32 %v915_v40, %v1068_v41  ;;  %v527_v44 = vrot.slane %v525_v35, 1  ;;  %v530_v45 = vmul.f32 %v915_v40, %v1006_v3  ;;  %v1411_v59 = vld [vmem:[#allocation16_spill] sm:$0xff] }
  0x92   :  { %v917_v46 = vpop.eup %916  ;;  %v469_v47 = vadd.f32 %v467_v62, %v464_v5  ;;  %v472_v53 = vrot.slane %v470_v18, 2  ;;  %v488_v12 = vadd.f32 %v486_v29, %v483_v60  ;;  %v491_v21 = vrot.slane %v489_v36, 2  ;;  %v1410_v5 = vld [vmem:[#allocation15_spill] sm:$0xff]  ;;  %v1412_v29 = vld [vmem:[#allocation17_spill] sm:$0xff] }
  0x93   :  { %v919_v38 = vpop.eup %918  ;;  %v475_v39 = vmul.f32 %v917_v46, %v1106_v24  ;;  %v494_v28 = vmul.f32 %v917_v46, %v1406_v61  ;;  %v507_v56 = vadd.f32 %v505_v17, %v502_v16  ;;  %v510_v55 = vrot.slane %v508_v25, 2 }
  0x94   :  { %v921_v26 = vpop.eup %920  ;;  %v474_v31 = vadd.f32 %v472_v53, %v469_v47  ;;  %v477_v34 = vmul.f32 %v919_v38, %v1407_v33  ;;  %v493_v52 = vadd.f32 %v491_v21, %v488_v12  ;;  %v496_v30 = vmul.f32 %v919_v38, %v1408_v8 }
  0x95   :  { %v479_v20 = vmul.f32 %v921_v26, %v1409_v9  ;;  %v498_v58 = vmul.f32 %v921_v26, %v1410_v5  ;;  %v512_v60 = vadd.f32 %v510_v55, %v507_v56  ;;  %v513_v35 = vmul.f32 %v917_v46, %v1411_v59 }
  0x96   :  { %v476_v62 = vadd.f32 %v475_v39, %v474_v31  ;;  %v495_v18 = vadd.f32 %v494_v28, %v493_v52  ;;  %v515_v36 = vmul.f32 %v919_v38, %v1412_v29  ;;  %v517_v16 = vmul.f32 %v921_v26, %v1135_v57 }
  0x97   :  { %v514_v17 = vadd.f32 %v513_v35, %v512_v60  ;;  %v529_v25 = vadd.f32 %v527_v44, %v524_v15  ;;  %v532_v47 = vrot.slane %v530_v45, 2  ;;  %v540_v53 = vadd.f32 %v868_v50, %v538_v42 }
  0x98   :  { %v478_v12 = vadd.f32 %v477_v34, %v476_v62  ;;  %v497_v21 = vadd.f32 %v496_v30, %v495_v18  ;;  %v543_v0 = vmul.f32 %v915_v40, %v1027_v13  ;;  %v556_v55 = vrot.slane %v554_v63, 7 }
  0x99   :  { %v516_v3 = vadd.f32 %v515_v36, %v514_v17  ;;  %v534_v41 = vadd.f32 %v532_v47, %v529_v25  ;;  %v542_v56 = vadd.f32 %v541_v43, %v540_v53  ;;  %v559_v38 = vmul.f32 %v915_v40, %v1081_v51 }
  0x9a   :  { %v480_v46 = vadd.f32 %v479_v20, %v478_v12  ;;  %v499_v39 = vadd.f32 %v498_v58, %v497_v21  ;;  %v545_v28 = vrot.slane %v543_v0, 1  ;;  %v558_v26 = vadd.f32 %v556_v55, %v553_v54 }
  0x9b   :  { %v518_v31 = vadd.f32 %v517_v16, %v516_v3  ;;  %922 = vtanh.f32 %v534_v41  ;;  %v869_v3 = vld [vmem:[%s1349_s0 + $0x18] sm:$0x7] }
  0x9c   :  { %v481_v15 = vadd.f32 %v480_v46, %v1085_v7  ;;  %v500_v42 = vadd.f32 %v499_v39, %v1088_v6  ;;  %v547_v45 = vadd.f32 %v545_v28, %v542_v56  ;;  %v560_v50 = vadd.f32 %v559_v38, %v558_v26  ;;  %v1413_v26 = vld [vmem:[#allocation9_spill] sm:$0xff] }
  0x9d   :  { %v519_v44 = vadd.f32 %v518_v31, %v1091_v11 }
  0x9e   :  { %924 = vtanh.f32 %v481_v15 }
  0x9f   :  { %926 = vtanh.f32 %v500_v42  ;;  %v1414_v42 = vld [vmem:[#allocation5_spill] sm:$0xff] }
  0xa0   :  { %928 = vtanh.f32 %v519_v44 }
  0xa1   :  { %930 = vtanh.f32 %v547_v45 }
  0xa2   :  { %932 = vtanh.f32 %v560_v50 }
  0xa8   :  { %v923_v43 = vpop.eup %922 }
  0xa9   :  { %v621_v41 = vmul.f32 %v923_v43, %v1002_v1  ;;  %v634_v54 = vmul.f32 %v923_v43, %v1008_v4  ;;  %v647_v0 = vmul.f32 %v923_v43, %v1403_v49  ;;  %v562_v48 = vmul.f32 %v923_v43, %v1029_v14 }
  0xaa   :  { %v581_v63 = vmul.f32 %v923_v43, %v1039_v22  ;;  %v600_v34 = vmul.f32 %v923_v43, %v1056_v32 }
  0xab   :  { %v925_v40 = vpop.eup %924  ;;  %v622_v52 = vadd.f32 %v869_v3, %v621_v41  ;;  %v636_v35 = vrot.slane %v634_v54, 7  ;;  %v649_v17 = vrot.slane %v647_v0, 6 }
  0xac   :  { %v927_v30 = vpop.eup %926  ;;  %v573_v20 = vmul.f32 %v925_v40, %v1106_v24  ;;  %v592_v58 = vmul.f32 %v925_v40, %v1406_v61  ;;  %v611_v60 = vmul.f32 %v925_v40, %v1411_v59 }
  0xad   :  { %v929_v62 = vpop.eup %928  ;;  %v575_v18 = vmul.f32 %v927_v30, %v1407_v33  ;;  %v594_v36 = vmul.f32 %v927_v30, %v1408_v8  ;;  %v613_v16 = vmul.f32 %v927_v30, %v1412_v29  ;;  %v638_v21 = vadd.f32 %v869_v3, %v636_v35  ;;  %v1416_v33 = vld [vmem:[#allocation8_spill] sm:$0xff] }
  0xae   :  { %v931_v25 = vpop.eup %930  ;;  %v577_v47 = vmul.f32 %v929_v62, %v1409_v9  ;;  %v596_v53 = vmul.f32 %v929_v62, %v1410_v5  ;;  %v615_v12 = vmul.f32 %v929_v62, %v1135_v57  ;;  %v1415_v5 = vld [vmem:[#allocation6_spill] sm:$0xff]  ;;  %v651_v8 = vadd.f32 %v869_v3, %v649_v17 }
  0xaf   :  { %v933_v56 = vpop.eup %932  ;;  %v563_v55 = vmul.f32 %v931_v25, %v1021_v10  ;;  %v582_v46 = vmul.f32 %v931_v25, %v1041_v23  ;;  %v601_v39 = vmul.f32 %v931_v25, %v1062_v37  ;;  %v623_v28 = vmul.f32 %v931_v25, %v1004_v2 }
  0xb0   :  { %v568_v38 = vmul.f32 %v933_v56, %v1037_v19  ;;  %v587_v31 = vmul.f32 %v933_v56, %v1048_v27  ;;  %v606_v15 = vmul.f32 %v933_v56, %v1413_v26  ;;  %v628_v44 = vmul.f32 %v933_v56, %v1414_v42 }
  0xb1   :  { %v565_v45 = vrot.slane %v563_v55, 1  ;;  %v584_v50 = vrot.slane %v582_v46, 1  ;;  %v603_v43 = vrot.slane %v601_v39, 1  ;;  %v625_v41 = vrot.slane %v623_v28, 1 }
  0xb2   :  { %v570_v54 = vrot.slane %v568_v38, 2  ;;  %v589_v0 = vrot.slane %v587_v31, 2  ;;  %v608_v40 = vrot.slane %v606_v15, 2  ;;  %v630_v30 = vrot.slane %v628_v44, 2 }
  0xb3   :  { %v567_v35 = vadd.f32 %v565_v45, %v562_v48  ;;  %v586_v62 = vadd.f32 %v584_v50, %v581_v63  ;;  %v605_v57 = vadd.f32 %v603_v43, %v600_v34  ;;  %v627_v29 = vadd.f32 %v625_v41, %v622_v52 }
  0xb4   :  { %v639_v59 = vmul.f32 %v931_v25, %v1415_v5  ;;  %v641_v9 = vmul.f32 %v933_v56, %v1027_v13  ;;  %v652_v61 = vmul.f32 %v931_v25, %v1416_v33  ;;  %v657_v15 = vmul.f32 %v933_v56, %v1081_v51 }
  0xb5   :  { %v572_v24 = vadd.f32 %v570_v54, %v567_v35  ;;  %v591_v55 = vadd.f32 %v589_v0, %v586_v62  ;;  %v610_v46 = vadd.f32 %v608_v40, %v605_v57  ;;  %v632_v39 = vadd.f32 %v630_v30, %v627_v29 }
  0xb6   :  { %v640_v28 = vadd.f32 %v639_v59, %v638_v21  ;;  %v643_v38 = vrot.slane %v641_v9, 1  ;;  %v654_v31 = vrot.slane %v652_v61, 7 }
  0xb7   :  { %v574_v48 = vadd.f32 %v573_v20, %v572_v24  ;;  %v593_v63 = vadd.f32 %v592_v58, %v591_v55  ;;  %v612_v34 = vadd.f32 %v611_v60, %v610_v46  ;;  %934 = vtanh.f32 %v632_v39 }
  0xb8   :  { %v645_v52 = vadd.f32 %v643_v38, %v640_v28  ;;  %v656_v44 = vadd.f32 %v654_v31, %v651_v8 }
  0xb9   :  { %v576_v45 = vadd.f32 %v575_v18, %v574_v48  ;;  %v595_v50 = vadd.f32 %v594_v36, %v593_v63  ;;  %v614_v3 = vadd.f32 %v613_v16, %v612_v34  ;;  %v1418_v63 = vld [vmem:[#allocation13_spill] sm:$0xff] }
  0xba   :  { %936 = vtanh.f32 %v645_v52  ;;  %v658_v17 = vadd.f32 %v657_v15, %v656_v44 }
  0xbb   :  { %v578_v25 = vadd.f32 %v577_v47, %v576_v45  ;;  %v597_v43 = vadd.f32 %v596_v53, %v595_v50  ;;  %v616_v57 = vadd.f32 %v615_v12, %v614_v3  ;;  %v1419_v3 = vld [vmem:[#allocation11_spill] sm:$0xff] }
  0xbc   :  { %938 = vtanh.f32 %v658_v17 }
  0xbd   :  { %v579_v9 = vadd.f32 %v578_v25, %v1085_v7  ;;  %v598_v61 = vadd.f32 %v597_v43, %v1088_v6  ;;  %v617_v24 = vadd.f32 %v616_v57, %v1091_v11  ;;  %v1420_v43 = vld [vmem:[#allocation14_spill] sm:$0xff] }
  0xbf   :  { %940 = vtanh.f32 %v579_v9 }
  0xc0   :  { %942 = vtanh.f32 %v598_v61 }
  0xc1   :  { %944 = vtanh.f32 %v617_v24  ;;  %v1422_v24 = vld [vmem:[#allocation16_spill] sm:$0xff] }
  0xc4   :  { %v935_v59 = vpop.eup %934 }
  0xc5   :  { %v719_v8 = vmul.f32 %v935_v59, %v1002_v1  ;;  %v732_v29 = vmul.f32 %v935_v59, %v1008_v4  ;;  %v745_v20 = vmul.f32 %v935_v59, %v1403_v49  ;;  %v660_v60 = vmul.f32 %v935_v59, %v1029_v14  ;;  %v870_v1 = vld [vmem:[%s1349_s0 + $0x1c] sm:$0x7]  ;;  %s860_s0 = sld [smem:[#allocation2 + $0x1e]] }
  0xc6   :  { %v679_v18 = vmul.f32 %v935_v59, %v1039_v22  ;;  %v698_v36 = vmul.f32 %v935_v59, %v1056_v32 }
  0xc7   :  { %v937_v58 = vpop.eup %936  ;;  %v720_v12 = vadd.f32 %v870_v1, %v719_v8  ;;  %v734_v21 = vrot.slane %v732_v29, 7  ;;  %v747_v41 = vrot.slane %v745_v20, 6 }
  0xc8   :  { %v661_v16 = vmul.f32 %v937_v58, %v1021_v10  ;;  %v680_v47 = vmul.f32 %v937_v58, %v1041_v23  ;;  %v699_v53 = vmul.f32 %v937_v58, %v1062_v37  ;;  %v721_v4 = vmul.f32 %v937_v58, %v1004_v2 }
  0xc9   :  { %v939_v49 = vpop.eup %938  ;;  %v737_v56 = vmul.f32 %v937_v58, %v1415_v5  ;;  %v1417_v5 = vld [vmem:[#allocation10_spill] sm:$0xff]  ;;  %v750_v8 = vmul.f32 %v937_v58, %v1416_v33 }
  0xca   :  { %v663_v54 = vrot.slane %v661_v16, 1  ;;  %v666_v0 = vmul.f32 %v939_v49, %v1037_v19  ;;  %v682_v40 = vrot.slane %v680_v47, 1  ;;  %v685_v30 = vmul.f32 %v939_v49, %v1048_v27 }
  0xcb   :  { %v701_v35 = vrot.slane %v699_v53, 1  ;;  %v704_v62 = vmul.f32 %v939_v49, %v1413_v26  ;;  %v723_v55 = vrot.slane %v721_v4, 1  ;;  %v726_v46 = vmul.f32 %v939_v49, %v1414_v42  ;;  %v1421_v42 = vld [vmem:[#allocation12_spill] sm:$0xff] }
  0xcc   :  { %v941_v39 = vpop.eup %940  ;;  %v665_v2 = vadd.f32 %v663_v54, %v660_v60  ;;  %v668_v28 = vrot.slane %v666_v0, 2  ;;  %v684_v38 = vadd.f32 %v682_v40, %v679_v18  ;;  %v687_v31 = vrot.slane %v685_v30, 2  ;;  %v1423_v60 = vld [vmem:[#allocation15_spill] sm:$0xff] }
  0xcd   :  { %v943_v15 = vpop.eup %942  ;;  %v671_v48 = vmul.f32 %v941_v39, %v1417_v5  ;;  %v690_v34 = vmul.f32 %v941_v39, %v1418_v63  ;;  %v703_v52 = vadd.f32 %v701_v35, %v698_v36  ;;  %v706_v44 = vrot.slane %v704_v62, 2  ;;  %v1424_v36 = vld [vmem:[#allocation17_spill] sm:$0xff] }
  0xce   :  { %v945_v45 = vpop.eup %944  ;;  %v670_v50 = vadd.f32 %v668_v28, %v665_v2  ;;  %v673_v17 = vmul.f32 %v943_v15, %v1419_v3  ;;  %v689_v25 = vadd.f32 %v687_v31, %v684_v38  ;;  %v692_v57 = vmul.f32 %v943_v15, %v1420_v43  ;;  %v1425_v2 = vld [vmem:[#allocation18_spill] sm:$0xff] }
  0xcf   :  { %v675_v9 = vmul.f32 %v945_v45, %v1421_v42  ;;  %v708_v61 = vadd.f32 %v706_v44, %v703_v52  ;;  %v709_v59 = vmul.f32 %v941_v39, %v1422_v24  ;;  %v694_v18 = vmul.f32 %v945_v45, %v1423_v60 }
  0xd0   :  { %v672_v29 = vadd.f32 %v671_v48, %v670_v50  ;;  %v691_v20 = vadd.f32 %v690_v34, %v689_v25  ;;  %v711_v16 = vmul.f32 %v943_v15, %v1424_v36  ;;  %v725_v53 = vadd.f32 %v723_v55, %v720_v12 }
  0xd1   :  { %v710_v47 = vadd.f32 %v709_v59, %v708_v61  ;;  %v728_v4 = vrot.slane %v726_v46, 2  ;;  %v736_v54 = vadd.f32 %v870_v1, %v734_v21  ;;  %v739_v30 = vmul.f32 %v939_v49, %v1027_v13 }
  0xd2   :  { %v674_v0 = vadd.f32 %v673_v17, %v672_v29  ;;  %v693_v40 = vadd.f32 %v692_v57, %v691_v20  ;;  %v749_v35 = vadd.f32 %v870_v1, %v747_v41  ;;  %v713_v39 = vmul.f32 %v945_v45, %v1425_v2 }
  0xd3   :  { %v712_v62 = vadd.f32 %v711_v16, %v710_v47  ;;  %v738_v28 = vadd.f32 %v737_v56, %v736_v54  ;;  %v752_v33 = vrot.slane %v750_v8, 7  ;;  %v730_v38 = vadd.f32 %v728_v4, %v725_v53 }
  0xd4   :  { %v676_v58 = vadd.f32 %v675_v9, %v674_v0  ;;  %v741_v31 = vrot.slane %v739_v30, 1  ;;  %v755_v48 = vmul.f32 %v939_v49, %v1081_v51  ;;  %v695_v55 = vadd.f32 %v694_v18, %v693_v40 }
  0xd5   :  { %v754_v15 = vadd.f32 %v752_v33, %v749_v35  ;;  %v714_v46 = vadd.f32 %v713_v39, %v712_v62  ;;  %946 = vtanh.f32 %v730_v38 }
  0xd6   :  { %v677_v12 = vadd.f32 %v676_v58, %v1085_v7  ;;  %v743_v21 = vadd.f32 %v741_v31, %v738_v28  ;;  %v696_v13 = vadd.f32 %v695_v55, %v1088_v6  ;;  %v820_v31 = vstv %s862_s3 }
  0xd7   :  { %v756_v34 = vadd.f32 %v755_v48, %v754_v15  ;;  %v715_v1 = vadd.f32 %v714_v46, %v1091_v11 }
  0xd8   :  { %948 = vtanh.f32 %v677_v12 }
  0xd9   :  { %950 = vtanh.f32 %v743_v21 }
  0xda   :  { %952 = vtanh.f32 %v756_v34 }
  0xdb   :  { %954 = vtanh.f32 %v696_v13 }
  0xdc   :  { %956 = vtanh.f32 %v715_v1 }
  0xe2   :  { %v947_v56 = vpop.eup %946 }
  0xe3   :  { %v758_v49 = vmul.f32 %v947_v56, %v1029_v14  ;;  %v777_v52 = vmul.f32 %v947_v56, %v1039_v22  ;;  %v796_v17 = vmul.f32 %v947_v56, %v1056_v32 }
  0xe5   :  { %v949_v41 = vpop.eup %948 }
  0xe6   :  { %v951_v51 = vpop.eup %950  ;;  %v769_v14 = vmul.f32 %v949_v41, %v1417_v5 }
  0xe7   :  { %v953_v44 = vpop.eup %952  ;;  %v759_v45 = vmul.f32 %v951_v51, %v1021_v10  ;;  %v778_v50 = vmul.f32 %v951_v51, %v1041_v23  ;;  %v797_v25 = vmul.f32 %v951_v51, %v1062_v37  ;;  %v788_v23 = vmul.f32 %v949_v41, %v1418_v63 }
  0xe8   :  { %v764_v57 = vmul.f32 %v953_v44, %v1037_v19  ;;  %v783_v9 = vmul.f32 %v953_v44, %v1048_v27  ;;  %v802_v61 = vmul.f32 %v953_v44, %v1413_v26  ;;  %v955_v59 = vpop.eup %954  ;;  %v807_v19 = vmul.f32 %v949_v41, %v1422_v24 }
  0xe9   :  { %v761_v8 = vrot.slane %v759_v45, 1  ;;  %v780_v22 = vrot.slane %v778_v50, 1  ;;  %v799_v29 = vrot.slane %v797_v25, 1  ;;  %v957_v32 = vpop.eup %956  ;;  %v771_v27 = vmul.f32 %v955_v59, %v1419_v3 }
  0xea   :  { %v766_v20 = vrot.slane %v764_v57, 2  ;;  %v785_v10 = vrot.slane %v783_v9, 2  ;;  %v804_v18 = vrot.slane %v802_v61, 2  ;;  %v790_v26 = vmul.f32 %v955_v59, %v1420_v43 }
  0xeb   :  { %v763_v16 = vadd.f32 %v761_v8, %v758_v49  ;;  %v782_v37 = vadd.f32 %v780_v22, %v777_v52  ;;  %v801_v47 = vadd.f32 %v799_v29, %v796_v17  ;;  %v809_v54 = vmul.f32 %v955_v59, %v1424_v36 }
  0xec   :  { %v773_v0 = vmul.f32 %v957_v32, %v1421_v42  ;;  %v792_v63 = vmul.f32 %v957_v32, %v1423_v60  ;;  %v811_v62 = vmul.f32 %v957_v32, %v1425_v2  ;;  %v815_v42 = vstv %s860_s0 }
  0xed   :  { %v768_v53 = vadd.f32 %v766_v20, %v763_v16  ;;  %v787_v4 = vadd.f32 %v785_v10, %v782_v37  ;;  %v806_v5 = vadd.f32 %v804_v18, %v801_v47  ;;  %v817_v60 = vstv %s861_s30 }
  0xef   :  { %v770_v40 = vadd.f32 %v769_v14, %v768_v53  ;;  %v789_v30 = vadd.f32 %v788_v23, %v787_v4  ;;  %v808_v35 = vadd.f32 %v807_v19, %v806_v5 }
  0xf1   :  { %v772_v39 = vadd.f32 %v771_v27, %v770_v40  ;;  %v791_v24 = vadd.f32 %v790_v26, %v789_v30  ;;  %v810_v28 = vadd.f32 %v809_v54, %v808_v35 }
  0xf3   :  { %v774_v3 = vadd.f32 %v773_v0, %v772_v39  ;;  %v793_v33 = vadd.f32 %v792_v63, %v791_v24  ;;  %v812_v43 = vadd.f32 %v811_v62, %v810_v28 }
  0xf5   :  { %v775_v58 = vadd.f32 %v774_v3, %v1085_v7  ;;  %v794_v38 = vadd.f32 %v793_v33, %v1088_v6  ;;  %v813_v36 = vadd.f32 %v812_v43, %v1091_v11  ;;  %v823_v6 = vstv %s863_s4 }
  0xf7   :  { %958 = vtanh.f32 %v775_v58 }
  0xf8   :  { %960 = vtanh.f32 %v794_v38 }
  0xf9   :  { %962 = vtanh.f32 %v813_v36 }
 0x104   :  { %v959_v2 = vpop.eup %958 }
 0x105   :  { %v961_v48 = vpop.eup %960  ;;  %v816_v15 = vmul.f32 %v959_v2, %v815_v42 }
 0x106   :  { %v963_v12 = vpop.eup %962  ;;  %v818_v55 = vmul.f32 %v961_v48, %v817_v60 }
 0x107   :  { %v821_v7 = vmul.f32 %v963_v12, %v820_v31 }
 0x108   :  { %v819_v21 = vadd.f32 %v818_v55, %v816_v15 }
 0x10a   :  { %v822_v46 = vadd.f32 %v821_v7, %v819_v21 }
 0x10c   :  { %v824_v11 = vadd.f32 %v823_v6, %v822_v46 }
 0x10e   :  { %825 = vst [vmem:[%s1351_s2] sm:$0x1] %v824_v11 }
 0x10f   :  { %830 = vsyncpa [#allocation3], 1 }

</bundles_post_ra>
